<compile_context>
chip_gen: v6e
topology: v6e:2x2x1
jax: 0.10.0
libtpu: 0.0.40
codegen_flags: <defaults>
</compile_context>

<pallas_src>
from functools import partial

import jax
import jax.numpy as jnp
from jax import lax
from jax.experimental import pallas as pl
from jax.experimental.pallas import tpu as pltpu


# ----------------------------- small helpers -----------------------------

def _recip(x):
    # EUP approximate reciprocal (off the VALU slots) + one Newton-Raphson step.
    r = pl.reciprocal(x, approx=True)
    return r * (2.0 - x * r)


def _mm(a, b, ca, cb, mxu_dtype):
    # MXU matmul contracting axis `ca` of a with axis `cb` of b, f32 accumulation.
    return lax.dot_general(
        a.astype(mxu_dtype), b.astype(mxu_dtype),
        (((ca,), (cb,)), ((), ())),
        preferred_element_type=jnp.float32)


def _q_softmax(q, heads, dim_head):
    # Softmax over dim_head (rows within each head) without any MXU work:
    # sublane-segmented max/sum via a (heads, dim_head, N) reshape (32 % 8 == 0,
    # so the reshape is a tile-aligned view).
    hidden, n = q.shape
    q3 = q.reshape(heads, dim_head, n)
    q3 = q3 - jnp.max(q3, axis=1, keepdims=True)
    e = jnp.exp(q3)
    sm = e * _recip(jnp.sum(e, axis=1, keepdims=True))
    return sm.reshape(hidden, n)


def _vmem_capacity_bytes():
    try:
        return int(pltpu.get_tpu_info().vmem_capacity_bytes)
    except Exception:
        return 64 * 1024 * 1024  # conservative fallback (v7x per-core VMEM)


# ----------------------------- fused (whole-sample) kernel -----------------------------

def _fused_kernel(x_ref, wq_ref, wk_ref, wv_ref, mask_ref, wout_ref, bout_ref,
                  gamma_ref, beta_ref, o_ref, *, heads, dim_head, eps, mxu_dtype):
    mm = lambda a, b, ca, cb: _mm(a, b, ca, cb, mxu_dtype)
    x = x_ref[0]                                   # (C, N), N on the lane axis

    # to_qkv 1x1 conv, weights pre-split host-side (no (3*hidden, N) buffer).
    q = mm(wq_ref[...], x, 0, 0)                   # (hidden, N)
    k = mm(wk_ref[...], x, 0, 0)                   # (hidden, N)
    v = mm(wv_ref[...], x, 0, 0)                   # (hidden, N)

    # k softmax over spatial N (lane axis).
    k_max = jnp.max(k, axis=-1, keepdims=True)
    k_exp = jnp.exp(k - k_max)
    k_sm = k_exp * _recip(jnp.sum(k_exp, axis=-1, keepdims=True))

    # q softmax over dim_head (per head) -- sublane-segmented, no MXU matmul.
    q_sm = _q_softmax(q, heads, dim_head)

    # context[d, e] = sum_n k_sm[d, n] * v[e, n]; mask_ref is the block-diagonal
    # per-head mask with the q-scale (dim_head**-0.5) already folded in.
    ctx = mm(k_sm, v, 1, 1) * mask_ref[...]        # (hidden, hidden)

    # out[e, n] = sum_d ctx[d, e] * q_sm[d, n]
    out = mm(ctx, q_sm, 0, 0)                      # (hidden, N)

    # to_out 1x1 conv + bias.
    y = mm(wout_ref[...], out, 1, 0) + bout_ref[...]   # (C, N)

    # GroupNorm(1, dim): mean/var over (C, N) -- two-pass (mean-subtracted) variance,
    # y is resident in VMEM so the second pass is cheap VPU work.
    inv_n = 1.0 / float(y.shape[0] * y.shape[1])
    mu = jnp.sum(y) * inv_n
    d = y - mu
    var = jnp.sum(d * d) * inv_n
    inv = lax.rsqrt(var + eps)
    o_ref[0] = (d * inv) * gamma_ref[...] + beta_ref[...]


# ----------------------------- N-tiled two-pass kernels -----------------------------

def _ctx_pass_kernel(x_ref, wk_ref, wv_ref, mask_ref, ctx_ref,
                     m_sc, l_sc, acc_sc, *, mxu_dtype):
    # Pass 1: flash-style accumulation of the k-softmax-weighted K.V^T context.
    mm = lambda a, b, ca, cb: _mm(a, b, ca, cb, mxu_dtype)
    nt = pl.program_id(1)

    @pl.when(nt == 0)
    def _():
        m_sc[...] = jnp.full_like(m_sc, -jnp.inf)
        l_sc[...] = jnp.zeros_like(l_sc)
        acc_sc[...] = jnp.zeros_like(acc_sc)

    x = x_ref[0]                                   # (C, TN)
    k = mm(wk_ref[...], x, 0, 0)                   # (hidden, TN)
    v = mm(wv_ref[...], x, 0, 0)                   # (hidden, TN)

    m_new = jnp.maximum(m_sc[...], jnp.max(k, axis=-1, keepdims=True))
    alpha = jnp.exp(m_sc[...] - m_new)             # (hidden, 1)
    p = jnp.exp(k - m_new)                         # (hidden, TN)
    l_sc[...] = alpha * l_sc[...] + jnp.sum(p, axis=-1, keepdims=True)
    acc_sc[...] = alpha * acc_sc[...] + mm(p, v, 1, 1)
    m_sc[...] = m_new

    @pl.when(nt == pl.num_programs(1) - 1)
    def _():
        # Normalize the k softmax and fold in the block-diagonal head mask + q scale.
        ctx_ref[0] = (acc_sc[...] * _recip(l_sc[...])) * mask_ref[...]


def _out_pass_kernel(x_ref, wq_ref, ctx_ref, wout_ref, bout_ref, y_ref,
                     *, heads, dim_head, mxu_dtype):
    # Pass 2: stream N tiles through q-softmax, q@ctx and to_out (fully parallel grid).
    mm = lambda a, b, ca, cb: _mm(a, b, ca, cb, mxu_dtype)
    x = x_ref[0]                                   # (C, TN)
    q = mm(wq_ref[...], x, 0, 0)                   # (hidden, TN)
    q_sm = _q_softmax(q, heads, dim_head)
    out = mm(ctx_ref[0], q_sm, 0, 0)               # (hidden, TN)
    y_ref[0] = mm(wout_ref[...], out, 1, 0) + bout_ref[...]


# ----------------------------- wrapper -----------------------------

def _fused_vmem_estimate(C, N, hidden, in_bytes):
    blocks = 2 * C * N * in_bytes + 2 * C * N * 4          # double-buffered x / y blocks
    weights = 4 * C * hidden * in_bytes + hidden * hidden * 4 + 3 * C * 4
    live = 8 * hidden * N * 4                               # q/k/v + softmax temps + out (f32)
    return blocks + weights + live + (2 << 20)


def linear_attention(x_nchw, params, *, heads=4, dim_head=32,
                     mxu_dtype=jnp.bfloat16, eps=1e-5,
                     tile_n=2048, force_tiled=False):
    B, C, H, W = x_nchw.shape
    N = H * W
    hidden = heads * dim_head
    # Lane/sublane-friendly shapes (general case would pad N to 128 / C to 8).
    assert N % 128 == 0 and C % 8 == 0 and hidden % 128 == 0

    in_bytes = jnp.dtype(mxu_dtype).itemsize

    # NCHW -> (B, C, N) is a pure reshape; N stays on the lane axis.  Stored in the
    # MXU dtype (bf16 by default) -> halved HBM/DMA bytes for the activations.
    x = x_nchw.reshape(B, C, N).astype(mxu_dtype)

    # Split to_qkv host-side so the kernel never materializes a (3*hidden, N) buffer.
    wqkv = params["wqkv"]                                        # (3*hidden, C)
    wq = jnp.transpose(wqkv[:hidden]).astype(mxu_dtype)          # (C, hidden) lane-dense
    wk = jnp.transpose(wqkv[hidden:2 * hidden]).astype(mxu_dtype)
    wv = jnp.transpose(wqkv[2 * hidden:]).astype(mxu_dtype)
    wout = params["wout"].astype(mxu_dtype)                      # (C, hidden)
    bout = params["bout"].reshape(C, 1).astype(jnp.float32)
    gamma = params["gamma"].reshape(C, 1).astype(jnp.float32)
    beta = params["beta"].reshape(C, 1).astype(jnp.float32)

    # Block-diagonal per-head mask with the q scale folded in, built once host-side.
    head_id = jnp.arange(hidden) // dim_head
    mask_scale = (head_id[:, None] == head_id[None, :]).astype(jnp.float32) \
        * jnp.float32(dim_head ** (-0.5))                        # (hidden, hidden)

    cap = _vmem_capacity_bytes()
    budget = int(cap * 0.85)
    fused_need = _fused_vmem_estimate(C, N, hidden, in_bytes)
    use_tiled = force_tiled or fused_need > budget

    if not use_tiled:
        # ---- fused whole-sample path (small / medium N) ----
        vmem_limit = int(min(max(32 << 20, fused_need * 1.25), budget))
        cost = pl.CostEstimate(
            flops=2 * B * N * (3 * C * hidden + 2 * hidden * hidden + hidden * C),
            transcendentals=2 * B * N * hidden,
            bytes_accessed=B * C * N * (in_bytes + 4) + 4 * C * hidden * in_bytes,
        )
        kernel = partial(_fused_kernel, heads=heads, dim_head=dim_head,
                         eps=eps, mxu_dtype=mxu_dtype)
        out = pl.pallas_call(
            kernel,
            out_shape=jax.ShapeDtypeStruct((B, C, N), jnp.float32),
            grid_spec=pltpu.PrefetchScalarGridSpec(
                num_scalar_prefetch=0,
                grid=(B,),
                in_specs=[
                    pl.BlockSpec((1, C, N), lambda b: (b, 0, 0)),
                    pl.BlockSpec((C, hidden), lambda b: (0, 0)),
                    pl.BlockSpec((C, hidden), lambda b: (0, 0)),
                    pl.BlockSpec((C, hidden), lambda b: (0, 0)),
                    pl.BlockSpec((hidden, hidden), lambda b: (0, 0)),
                    pl.BlockSpec((C, hidden), lambda b: (0, 0)),
                    pl.BlockSpec((C, 1), lambda b: (0, 0)),
                    pl.BlockSpec((C, 1), lambda b: (0, 0)),
                    pl.BlockSpec((C, 1), lambda b: (0, 0)),
                ],
                out_specs=pl.BlockSpec((1, C, N), lambda b: (b, 0, 0)),
            ),
            compiler_params=pltpu.CompilerParams(
                dimension_semantics=("parallel",),
                vmem_limit_bytes=vmem_limit,
            ),
            cost_estimate=cost,
        )(x, wq, wk, wv, mask_scale, wout, bout, gamma, beta)
        # TODO(synk): for very small N, fold several batch samples into one grid step
        # (block (G, C, N) with batched matmuls) to amortize the ~0.35 us per-step cost.
        return out.reshape(B, C, H, W)

    # ---- N-tiled two-pass path (large feature maps; required on v7x) ----
    tile_n = min(tile_n, N)
    assert tile_n % 128 == 0 and N % tile_n == 0
    NT = N // tile_n
    vmem_limit = int(min(max(32 << 20, 16 * hidden * tile_n * 4 + (4 << 20)), budget))

    ctx = pl.pallas_call(
        partial(_ctx_pass_kernel, mxu_dtype=mxu_dtype),
        out_shape=jax.ShapeDtypeStruct((B, hidden, hidden), jnp.float32),
        grid_spec=pltpu.PrefetchScalarGridSpec(
            num_scalar_prefetch=0,
            grid=(B, NT),
            in_specs=[
                pl.BlockSpec((1, C, tile_n), lambda b, t: (b, 0, t)),
                pl.BlockSpec((C, hidden), lambda b, t: (0, 0)),
                pl.BlockSpec((C, hidden), lambda b, t: (0, 0)),
                pl.BlockSpec((hidden, hidden), lambda b, t: (0, 0)),
            ],
            out_specs=pl.BlockSpec((1, hidden, hidden), lambda b, t: (b, 0, 0)),
            scratch_shapes=[
                pltpu.VMEM((hidden, 1), jnp.float32),   # running max
                pltpu.VMEM((hidden, 1), jnp.float32),   # running sum-exp
                pltpu.VMEM((hidden, hidden), jnp.float32),  # context accumulator
            ],
        ),
        compiler_params=pltpu.CompilerParams(
            dimension_semantics=("parallel", "arbitrary"),
            vmem_limit_bytes=vmem_limit,
        ),
    )(x, wk, wv, mask_scale)

    y = pl.pallas_call(
        partial(_out_pass_kernel, heads=heads, dim_head=dim_head, mxu_dtype=mxu_dtype),
        out_shape=jax.ShapeDtypeStruct((B, C, N), jnp.float32),
        grid_spec=pltpu.PrefetchScalarGridSpec(
            num_scalar_prefetch=0,
            grid=(B, NT),
            in_specs=[
                pl.BlockSpec((1, C, tile_n), lambda b, t: (b, 0, t)),
                pl.BlockSpec((C, hidden), lambda b, t: (0, 0)),
                pl.BlockSpec((1, hidden, hidden), lambda b, t: (b, 0, 0)),
                pl.BlockSpec((C, hidden), lambda b, t: (0, 0)),
                pl.BlockSpec((C, 1), lambda b, t: (0, 0)),
            ],
            out_specs=pl.BlockSpec((1, C, tile_n), lambda b, t: (b, 0, t)),
        ),
        compiler_params=pltpu.CompilerParams(
            dimension_semantics=("parallel", "parallel"),  # both grid axes feed v7x's 2 TCs
            vmem_limit_bytes=vmem_limit,
        ),
    )(x, wq, ctx, wout, bout)

    # TODO(synk): fuse the GroupNorm of the tiled path into a third Pallas sweep
    # (accumulate sum/sumsq in pass 2, normalize in a streaming pass 3); done in XLA here.
    mu = jnp.mean(y, axis=(1, 2), keepdims=True)
    var = jnp.mean(jnp.square(y - mu), axis=(1, 2), keepdims=True)
    yn = (y - mu) * lax.rsqrt(var + eps)
    yn = yn * gamma[None] + beta[None]
    return yn.reshape(B, C, H, W)


# ----------------------------- pure-JAX reference -----------------------------

def reference(x_nchw, params, *, heads=4, dim_head=32):
    """Pure-JAX reference mirroring the PyTorch forward (highest precision)."""
    hp = jax.lax.Precision.HIGHEST
    B, C, H, W = x_nchw.shape
    N = H * W
    hidden = heads * dim_head
    scale = dim_head ** (-0.5)
    x = x_nchw.reshape(B, C, N)
    qkv = jnp.einsum('bcn,mc->bmn', x, params["wqkv"], precision=hp)
    q, k, v = jnp.split(qkv, 3, axis=1)
    q = q.reshape(B, heads, dim_head, N)
    k = k.reshape(B, heads, dim_head, N)
    v = v.reshape(B, heads, dim_head, N)
    q = jax.nn.softmax(q, axis=-2) * scale
    k = jax.nn.softmax(k, axis=-1)
    context = jnp.einsum('bhdn,bhen->bhde', k, v, precision=hp)
    out = jnp.einsum('bhde,bhdn->bhen', context, q, precision=hp).reshape(B, hidden, N)
    y = jnp.einsum('bmn,cm->bcn', out, params["wout"], precision=hp) \
        + params["bout"][None, :, None]
    mu = jnp.mean(y, axis=(1, 2), keepdims=True)
    var = jnp.mean((y - mu) ** 2, axis=(1, 2), keepdims=True)
    yn = (y - mu) / jnp.sqrt(var + 1e-5)
    yn = yn * params["gamma"][None, :, None] + params["beta"][None, :, None]
    return yn.reshape(B, C, H, W)


if __name__ == "__main__":
    heads, dim_head = 4, 32
    hidden = heads * dim_head
    B, C, H, W = 2, 8, 16, 16

    key = jax.random.PRNGKey(0)
    kx, kq, ko, kb = jax.random.split(key, 4)

    x = jax.random.normal(kx, (B, C, H, W), dtype=jnp.float32)

    # Deterministic parameter init (synthetic weights, not a checkpoint).
    params = {
        "wqkv": 0.05 * jax.random.normal(kq, (3 * hidden, C), jnp.float32),
        "wout": 0.05 * jax.random.normal(ko, (C, hidden), jnp.float32),
        "bout": 0.01 * jax.random.normal(kb, (C,), jnp.float32),
        "gamma": jnp.ones((C,), jnp.float32),
        "beta": jnp.zeros((C,), jnp.float32),
    }

    y_ref = reference(x, params, heads=heads, dim_head=dim_head)

    # 1) fused path, f32 MXU (tight numerical check of the algorithm).
    y_f32 = jax.block_until_ready(
        linear_attention(x, params, heads=heads, dim_head=dim_head,
                         mxu_dtype=jnp.float32))
    assert y_f32.shape == (B, C, H, W)
    assert jnp.allclose(y_f32, y_ref, atol=1e-3, rtol=1e-3), \
        float(jnp.max(jnp.abs(y_f32 - y_ref)))

    # 2) fused path, bf16 MXU (default fast path).
    y_bf16 = jax.block_until_ready(
        linear_attention(x, params, heads=heads, dim_head=dim_head))
    assert jnp.allclose(y_bf16, y_ref, atol=3e-2, rtol=3e-2), \
        float(jnp.max(jnp.abs(y_bf16 - y_ref)))

    # 3) N-tiled two-pass path (what large feature maps dispatch to on v7x), forced
    #    at a small tile size so the flash-style context accumulation is exercised.
    y_tiled = jax.block_until_ready(
        linear_attention(x, params, heads=heads, dim_head=dim_head,
                         force_tiled=True, tile_n=128))
    assert jnp.allclose(y_tiled, y_ref, atol=3e-2, rtol=3e-2), \
        float(jnp.max(jnp.abs(y_tiled - y_ref)))

    print("KERNEL_OK")
</pallas_src>

<mosaic_0001>
module attributes {stable_mosaic.version = 11 : i64} {
  func.func @_fused_kernel(%arg0: i32, %arg1: memref<1x8x256xf32, #tpu.memory_space<vmem>>, %arg2: memref<8x128xf32, #tpu.memory_space<vmem>>, %arg3: memref<8x128xf32, #tpu.memory_space<vmem>>, %arg4: memref<8x128xf32, #tpu.memory_space<vmem>>, %arg5: memref<128x128xf32, #tpu.memory_space<vmem>>, %arg6: memref<8x128xf32, #tpu.memory_space<vmem>>, %arg7: memref<8x1xf32, #tpu.memory_space<vmem>>, %arg8: memref<8x1xf32, #tpu.memory_space<vmem>>, %arg9: memref<8x1xf32, #tpu.memory_space<vmem>>, %arg10: memref<1x8x256xf32, #tpu.memory_space<vmem>>) attributes {dimension_semantics = [#tpu.dimension_semantics<parallel>], iteration_bounds = array<i64: 2>, scalar_prefetch = 0 : i64, scratch_operands = 0 : i64, tpu.core_type = #tpu.core_type<tc>, window_params = [{transform_indices = @transform_0, window_bounds = array<i64: 1, 8, 256>}, {pipeline_mode = #tpu.pipeline_mode<synchronous>, transform_indices = @transform_1, window_bounds = array<i64: 8, 128>}, {pipeline_mode = #tpu.pipeline_mode<synchronous>, transform_indices = @transform_2, window_bounds = array<i64: 8, 128>}, {pipeline_mode = #tpu.pipeline_mode<synchronous>, transform_indices = @transform_3, window_bounds = array<i64: 8, 128>}, {pipeline_mode = #tpu.pipeline_mode<synchronous>, transform_indices = @transform_4, window_bounds = array<i64: 128, 128>}, {pipeline_mode = #tpu.pipeline_mode<synchronous>, transform_indices = @transform_5, window_bounds = array<i64: 8, 128>}, {pipeline_mode = #tpu.pipeline_mode<synchronous>, transform_indices = @transform_6, window_bounds = array<i64: 8, 1>}, {pipeline_mode = #tpu.pipeline_mode<synchronous>, transform_indices = @transform_7, window_bounds = array<i64: 8, 1>}, {pipeline_mode = #tpu.pipeline_mode<synchronous>, transform_indices = @transform_8, window_bounds = array<i64: 8, 1>}, {transform_indices = @transform_9, window_bounds = array<i64: 1, 8, 256>}]} {
    %c0 = arith.constant 0 : index
    %c0_0 = arith.constant 0 : index
    %c0_1 = arith.constant 0 : index
    %0 = vector.load %arg1[%c0, %c0_0, %c0_1] : memref<1x8x256xf32, #tpu.memory_space<vmem>>, vector<1x8x256xf32>
    %1 = vector.shape_cast %0 : vector<1x8x256xf32> to vector<8x256xf32>
    %c0_2 = arith.constant 0 : index
    %c0_3 = arith.constant 0 : index
    %2 = vector.load %arg2[%c0_2, %c0_3] : memref<8x128xf32, #tpu.memory_space<vmem>>, vector<8x128xf32>
    %cst = arith.constant dense<0.000000e+00> : vector<128x256xf32>
    %3 = tpu.matmul %2, %1, %cst {dimension_numbers = #tpu.dot_dimension_numbers<[0], [0], [1], [1], [0, 1, 1, 1], [], []>} : vector<8x128xf32>, vector<8x256xf32>, vector<128x256xf32> -> vector<128x256xf32>
    %c0_4 = arith.constant 0 : index
    %c0_5 = arith.constant 0 : index
    %4 = vector.load %arg3[%c0_4, %c0_5] : memref<8x128xf32, #tpu.memory_space<vmem>>, vector<8x128xf32>
    %cst_6 = arith.constant dense<0.000000e+00> : vector<128x256xf32>
    %5 = tpu.matmul %4, %1, %cst_6 {dimension_numbers = #tpu.dot_dimension_numbers<[0], [0], [1], [1], [0, 1, 1, 1], [], []>} : vector<8x128xf32>, vector<8x256xf32>, vector<128x256xf32> -> vector<128x256xf32>
    %c0_7 = arith.constant 0 : index
    %c0_8 = arith.constant 0 : index
    %6 = vector.load %arg4[%c0_7, %c0_8] : memref<8x128xf32, #tpu.memory_space<vmem>>, vector<8x128xf32>
    %cst_9 = arith.constant dense<0.000000e+00> : vector<128x256xf32>
    %7 = tpu.matmul %6, %1, %cst_9 {dimension_numbers = #tpu.dot_dimension_numbers<[0], [0], [1], [1], [0, 1, 1, 1], [], []>} : vector<8x128xf32>, vector<8x256xf32>, vector<128x256xf32> -> vector<128x256xf32>
    %cst_10 = arith.constant dense<0xFF800000> : vector<128xf32>
    %8 = vector.multi_reduction <maximumf>, %5, %cst_10 [1] : vector<128x256xf32> to vector<128xf32>
    %9 = vector.shape_cast %8 : vector<128xf32> to vector<128x1xf32>
    %10 = vector.broadcast %9 : vector<128x1xf32> to vector<128x256xf32>
    %11 = arith.subf %5, %10 : vector<128x256xf32>
    %12 = math.exp %11 : vector<128x256xf32>
    %cst_11 = arith.constant dense<0.000000e+00> : vector<128xf32>
    %13 = vector.multi_reduction <add>, %12, %cst_11 [1] : vector<128x256xf32> to vector<128xf32>
    %14 = vector.shape_cast %13 : vector<128xf32> to vector<128x1xf32>
    %15 = tpu.reciprocal %14 {approx = true} : vector<128x1xf32> -> vector<128x1xf32>
    %16 = arith.mulf %14, %15 : vector<128x1xf32>
    %cst_12 = arith.constant 2.000000e+00 : f32
    %17 = vector.broadcast %cst_12 : f32 to vector<128x1xf32>
    %18 = arith.subf %17, %16 : vector<128x1xf32>
    %19 = arith.mulf %15, %18 : vector<128x1xf32>
    %20 = vector.broadcast %19 : vector<128x1xf32> to vector<128x256xf32>
    %21 = arith.mulf %12, %20 : vector<128x256xf32>
    %22 = vector.shape_cast %3 : vector<128x256xf32> to vector<4x32x256xf32>
    %cst_13 = arith.constant dense<0xFF800000> : vector<4x256xf32>
    %23 = vector.multi_reduction <maximumf>, %22, %cst_13 [1] : vector<4x32x256xf32> to vector<4x256xf32>
    %24 = vector.shape_cast %23 : vector<4x256xf32> to vector<4x1x256xf32>
    %25 = vector.broadcast %24 : vector<4x1x256xf32> to vector<4x32x256xf32>
    %26 = arith.subf %22, %25 : vector<4x32x256xf32>
    %27 = math.exp %26 : vector<4x32x256xf32>
    %cst_14 = arith.constant dense<0.000000e+00> : vector<4x256xf32>
    %28 = vector.multi_reduction <add>, %27, %cst_14 [1] : vector<4x32x256xf32> to vector<4x256xf32>
    %29 = vector.shape_cast %28 : vector<4x256xf32> to vector<4x1x256xf32>
    %30 = tpu.reciprocal %29 {approx = true} : vector<4x1x256xf32> -> vector<4x1x256xf32>
    %31 = arith.mulf %29, %30 : vector<4x1x256xf32>
    %cst_15 = arith.constant 2.000000e+00 : f32
    %32 = vector.broadcast %cst_15 : f32 to vector<4x1x256xf32>
    %33 = arith.subf %32, %31 : vector<4x1x256xf32>
    %34 = arith.mulf %30, %33 : vector<4x1x256xf32>
    %35 = vector.broadcast %34 : vector<4x1x256xf32> to vector<4x32x256xf32>
    %36 = arith.mulf %27, %35 : vector<4x32x256xf32>
    %37 = vector.shape_cast %36 : vector<4x32x256xf32> to vector<128x256xf32>
    %cst_16 = arith.constant dense<0.000000e+00> : vector<128x128xf32>
    %38 = tpu.matmul %21, %7, %cst_16 {dimension_numbers = #tpu.dot_dimension_numbers<[1], [1], [0], [0], [0, 0, 1, 0], [], []>} : vector<128x256xf32>, vector<128x256xf32>, vector<128x128xf32> -> vector<128x128xf32>
    %c0_17 = arith.constant 0 : index
    %c0_18 = arith.constant 0 : index
    %39 = vector.load %arg5[%c0_17, %c0_18] : memref<128x128xf32, #tpu.memory_space<vmem>>, vector<128x128xf32>
    %40 = arith.mulf %38, %39 : vector<128x128xf32>
    %cst_19 = arith.constant dense<0.000000e+00> : vector<128x256xf32>
    %41 = tpu.matmul %40, %37, %cst_19 {dimension_numbers = #tpu.dot_dimension_numbers<[0], [0], [1], [1], [0, 1, 1, 1], [], []>} : vector<128x128xf32>, vector<128x256xf32>, vector<128x256xf32> -> vector<128x256xf32>
    %c0_20 = arith.constant 0 : index
    %c0_21 = arith.constant 0 : index
    %42 = vector.load %arg6[%c0_20, %c0_21] : memref<8x128xf32, #tpu.memory_space<vmem>>, vector<8x128xf32>
    %cst_22 = arith.constant dense<0.000000e+00> : vector<8x256xf32>
    %43 = tpu.matmul %42, %41, %cst_22 {dimension_numbers = #tpu.dot_dimension_numbers<[1], [0], [0], [1], [0, 0, 1, 1], [], []>} : vector<8x128xf32>, vector<128x256xf32>, vector<8x256xf32> -> vector<8x256xf32>
    %c0_23 = arith.constant 0 : index
    %c0_24 = arith.constant 0 : index
    %44 = vector.load %arg7[%c0_23, %c0_24] : memref<8x1xf32, #tpu.memory_space<vmem>>, vector<8x1xf32>
    %45 = vector.broadcast %44 : vector<8x1xf32> to vector<8x256xf32>
    %46 = arith.addf %43, %45 : vector<8x256xf32>
    %47 = vector.shape_cast %46 : vector<8x256xf32> to vector<1x8x256xf32>
    %cst_25 = arith.constant dense<0.000000e+00> : vector<1xf32>
    %48 = vector.multi_reduction <add>, %47, %cst_25 [1, 2] : vector<1x8x256xf32> to vector<1xf32>
    %49 = vector.shape_cast %48 : vector<1xf32> to vector<1x1x1xf32>
    %50 = vector.extract %49[0, 0, 0] : f32 from vector<1x1x1xf32>
    %cst_26 = arith.constant 4.8828125E-4 : f32
    %51 = arith.mulf %50, %cst_26 : f32
    %52 = vector.broadcast %51 : f32 to vector<8x256xf32>
    %53 = arith.subf %46, %52 : vector<8x256xf32>
    %54 = arith.mulf %53, %53 : vector<8x256xf32>
    %55 = vector.shape_cast %54 : vector<8x256xf32> to vector<1x8x256xf32>
    %cst_27 = arith.constant dense<0.000000e+00> : vector<1xf32>
    %56 = vector.multi_reduction <add>, %55, %cst_27 [1, 2] : vector<1x8x256xf32> to vector<1xf32>
    %57 = vector.shape_cast %56 : vector<1xf32> to vector<1x1x1xf32>
    %58 = vector.extract %57[0, 0, 0] : f32 from vector<1x1x1xf32>
    %cst_28 = arith.constant 4.8828125E-4 : f32
    %59 = arith.mulf %58, %cst_28 : f32
    %cst_29 = arith.constant 9.99999974E-6 : f32
    %60 = arith.addf %59, %cst_29 : f32
    %61 = math.rsqrt %60 : f32
    %62 = vector.broadcast %61 : f32 to vector<8x256xf32>
    %63 = arith.mulf %53, %62 : vector<8x256xf32>
    %c0_30 = arith.constant 0 : index
    %c0_31 = arith.constant 0 : index
    %64 = vector.load %arg8[%c0_30, %c0_31] : memref<8x1xf32, #tpu.memory_space<vmem>>, vector<8x1xf32>
    %65 = vector.broadcast %64 : vector<8x1xf32> to vector<8x256xf32>
    %66 = arith.mulf %63, %65 : vector<8x256xf32>
    %c0_32 = arith.constant 0 : index
    %c0_33 = arith.constant 0 : index
    %67 = vector.load %arg9[%c0_32, %c0_33] : memref<8x1xf32, #tpu.memory_space<vmem>>, vector<8x1xf32>
    %68 = vector.broadcast %67 : vector<8x1xf32> to vector<8x256xf32>
    %69 = arith.addf %66, %68 : vector<8x256xf32>
    %c0_34 = arith.constant 0 : index
    %c0_35 = arith.constant 0 : index
    %c0_36 = arith.constant 0 : index
    %70 = vector.load %arg10[%c0_34, %c0_35, %c0_36] : memref<1x8x256xf32, #tpu.memory_space<vmem>>, vector<1x8x256xf32>
    %71 = vector.shape_cast %70 : vector<1x8x256xf32> to vector<8x256xf32>
    %72 = vector.shape_cast %69 : vector<8x256xf32> to vector<1x8x256xf32>
    tpu.vector_store %arg10[%c0_34, %c0_35, %c0_36], %72 {strides = array<i32>} : memref<1x8x256xf32, #tpu.memory_space<vmem>>, vector<1x8x256xf32>,
    return
  }
  func.func @transform_0(%arg0: i32) -> (i32, i32, i32) {
    %c0_i32 = arith.constant 0 : i32
    %c0_i32_0 = arith.constant 0 : i32
    %c0_i32_1 = arith.constant 0 : i32
    return %arg0, %c0_i32, %c0_i32_0 : i32, i32, i32
  }
  func.func @transform_1(%arg0: i32) -> (i32, i32) {
    %c0_i32 = arith.constant 0 : i32
    %c0_i32_0 = arith.constant 0 : i32
    %c0_i32_1 = arith.constant 0 : i32
    return %c0_i32, %c0_i32_0 : i32, i32
  }
  func.func @transform_2(%arg0: i32) -> (i32, i32) {
    %c0_i32 = arith.constant 0 : i32
    %c0_i32_0 = arith.constant 0 : i32
    %c0_i32_1 = arith.constant 0 : i32
    return %c0_i32, %c0_i32_0 : i32, i32
  }
  func.func @transform_3(%arg0: i32) -> (i32, i32) {
    %c0_i32 = arith.constant 0 : i32
    %c0_i32_0 = arith.constant 0 : i32
    %c0_i32_1 = arith.constant 0 : i32
    return %c0_i32, %c0_i32_0 : i32, i32
  }
  func.func @transform_4(%arg0: i32) -> (i32, i32) {
    %c0_i32 = arith.constant 0 : i32
    %c0_i32_0 = arith.constant 0 : i32
    %c0_i32_1 = arith.constant 0 : i32
    return %c0_i32, %c0_i32_0 : i32, i32
  }
  func.func @transform_5(%arg0: i32) -> (i32, i32) {
    %c0_i32 = arith.constant 0 : i32
    %c0_i32_0 = arith.constant 0 : i32
    %c0_i32_1 = arith.constant 0 : i32
    return %c0_i32, %c0_i32_0 : i32, i32
  }
  func.func @transform_6(%arg0: i32) -> (i32, i32) {
    %c0_i32 = arith.constant 0 : i32
    %c0_i32_0 = arith.constant 0 : i32
    %c0_i32_1 = arith.constant 0 : i32
    return %c0_i32, %c0_i32_0 : i32, i32
  }
  func.func @transform_7(%arg0: i32) -> (i32, i32) {
    %c0_i32 = arith.constant 0 : i32
    %c0_i32_0 = arith.constant 0 : i32
    %c0_i32_1 = arith.constant 0 : i32
    return %c0_i32, %c0_i32_0 : i32, i32
  }
  func.func @transform_8(%arg0: i32) -> (i32, i32) {
    %c0_i32 = arith.constant 0 : i32
    %c0_i32_0 = arith.constant 0 : i32
    %c0_i32_1 = arith.constant 0 : i32
    return %c0_i32, %c0_i32_0 : i32, i32
  }
  func.func @transform_9(%arg0: i32) -> (i32, i32, i32) {
    %c0_i32 = arith.constant 0 : i32
    %c0_i32_0 = arith.constant 0 : i32
    %c0_i32_1 = arith.constant 0 : i32
    return %arg0, %c0_i32, %c0_i32_0 : i32, i32, i32
  }
}

</mosaic_0001>

<bundles_post_ra>
// kernel: tpu_custom_call.1
= control target key start
LH: loop header
LB: loop body
LE: loop exit
PB: predicated region body
PF: predicated region fallthrough
CT: control target
= control target key end

     0   :  { %s3707_s0 = inlined_call_operand.hbm [shape: f32[2,8,256], index: 0, kind: input, shape index: {}]   ;;  %s3708_s1 = inlined_call_operand.vmem [shape: f32[8,128], index: 1, kind: input, shape index: {}]   ;;  %s3709_s2 = inlined_call_operand.vmem [shape: f32[8,128], index: 2, kind: input, shape index: {}]   ;;  %s3710_s3 = inlined_call_operand.vmem [shape: f32[8,128], index: 3, kind: input, shape index: {}]   ;;  %s3711_s4 = inlined_call_operand.hbm [shape: f32[128,128], index: 4, kind: input, shape index: {}]   ;;  %s3712_s5 = inlined_call_operand.vmem [shape: f32[8,128], index: 5, kind: input, shape index: {}]   ;;  %s3713_s6 = inlined_call_operand.vmem [shape: f32[8,1], index: 6, kind: input, shape index: {}]   ;;  %s3714_s7 = inlined_call_operand.vmem [shape: f32[8,1], index: 7, kind: input, shape index: {}]   ;;  %s3715_s8 = inlined_call_operand.vmem [shape: f32[8,1], index: 8, kind: input, shape index: {}]   ;;  %s3716_s9 = inlined_call_operand.hbm [shape: f32[2,8,256], index: 9, kind: output, shape index: {}]  }
   0x1   :  { %3753 = sst [smem:[#allocation56_spill]] %s3711_s4 }
   0x2   :  { %14 = vsyncpa [#allocation3], 0 }
   0x3   :  { %16 = vsyncpa [#allocation3 + $0x1], 0 }
   0x4   :  { %17 = vsyncpa [#allocation6], 0 }
   0x5   :  { %18 = vsyncpa [#allocation4], 0 }
   0x6   :  { %20 = vsyncpa [#allocation4 + $0x1], 0  ;;  %s2775_s30 = smov 0   ;;  %s2777_s10 = smov 0  }
   0x7   :  { %s2779_s11 = smov 0   ;;  %s2781_s12 = smov 0  }
   0x8 LB: > { %s2796_s13 = sadd.s32 4294967295, %s2716_s12   ;;  %s2280_s14 = sadd.s32 4294967294, %s2716_s12   ;;  %s2716_s12 = sphi %s2781_s12, %s3858_s12   ;;  %s2712_s11 = sphi %s2779_s11, %s3862_s11   ;;  %s2708_s10 = sphi %s2777_s10, %s3861_s10   ;;  %s2704_s30 = sphi %s2775_s30, %s3860_s30  }
   0x9   : > { %p46_p0 = scmp.ne.s32.totalorder %s2708_s10, %s2704_s30  ;;  %p3720_p1 = scmp.eq.s32.totalorder %s2796_s13, 0 }
   0xa   : > { %p244_p3 = scmp.eq.s32.totalorder %s2280_s14, 1  ;;  %p2281_p5 = scmp.ge.s32.totalorder %s2716_s12, 1 }
   0xb   : > { %p2805_p4 = por %p3720_p1, %p46_p0  ;;  %p251_p7 = scmp.lt.s32.totalorder %s2716_s12, 3 }
   0xc   : > { %p2810_p6 = por %p244_p3, %p46_p0  ;;  %s2718_s18 = smov [#allocation5]  }
   0xd   : > { %s3754_s15 = scalar_select %p2805_p4, 1, 0 }
   0xe   : > { %s3755_s16 = scalar_select %p2810_p6, 1, 0 }
   0xf   : > { %p2815_p8 = pnand %p2281_p5, %p251_p7  ;;  %s272_s19 = sshll.u32 %s2718_s18, 4  ;;  %s273_s19 = int_to_ptr.vmem [resolvable:$true] %s272_s19 }
  0x10   : > { %3756 = sst [smem:[#allocation11_spill]] %s3755_s16  ;;  %s2829_s21 = sadd.s32 1, %s2716_s12  }
  0x11   : > { %s3757_s17 = scalar_select %p2815_p8, 1, 0 }
  0x12   : > { %p2362_p9 = pneg %p2815_p8  ;;  %3759 = sst [smem:[#allocation12_spill]] %s2829_s21 }
  0x13   : > { %s33_s22 = sadd.s32 1, %s2712_s11  ;;  %s30_s23 = ssub.s32 %s2716_s12, %s2829_s21 }
  0x14   : > { %p2824_p11 = pnand %p2362_p9, %p3720_p1  ;;  %s2605_s24 = scalar_lea.vmem %s273_s19, 2048 }
  0x15   : > { %p2606_p13 = scmp.ne.s32.totalorder %s273_s19, %s2605_s24  ;;  %p2613_p5 = scmp.lt.s32.totalorder %s273_s19, %s273_s19 }
  0x16   : > { %p2596_p12 = pneg %p2824_p11  ;;  %p2614_p7 = scmp.lt.s32.totalorder %s2605_s24, %s2605_s24 }
  0x18   : > { %p2608_p0 = pnand %p2606_p13, %p2596_p12  ;;  %p2615_p10 = por %p2614_p7, %p2613_p5 }
  0x1a   : > { %p2609_p3 = pneg %p2608_p0 }
  0x1c   : > { %p2616_p2 = pnand %p2615_p10, %p2609_p3 }
  0x1e   : > { %2619 = shalt.err (!%p2616_p2)
}
  0x1f   : > { %s2719_s25 = smov 128   ;;  %s2720_s26 = smov 8  }
  0x20   : > { %s3760_s4 = sld [smem:[#allocation56_spill]]  ;;  %p31_p9 = scmp.eq.s32.totalorder %s30_s23, 0 }
  0x21   : > { %p40_p12 = scmp.ne.s32.totalorder %s2712_s11, %s2708_s10  ;;  %p41_p10 = scmp.eq.s32.totalorder %s2716_s12, 0 }
  0x22   : > { %p2375_p2 = scmp.lt.s32.totalorder %s2716_s12, 2  ;;  %p3762_p0 = scmp.eq.s32.totalorder %s2796_s13, 1 }
  0x23   : > { %s2846_s29 = scalar_select %p31_p9, %s2712_s11, %s33_s22  }
  0x24   : > { %p42_p13 = por %p41_p10, %p40_p12  ;;  %p2850_p3 = por %p3762_p0, %p40_p12 }
  0x25   : > { %3761 = sst [smem:[#allocation13_spill]] %s2846_s29  ;;  %s298_s18 = sand.u32 1, %s2712_s11  }
  0x26   : > { %2365 = dma.hbm_to_vmem [thread:$0]  (!%p2824_p11), %s3760_s4, 2048, %s273_s19, [#allocation6], %s2719_s25, %s2719_s25, %s2720_s26  }
  0x27   : > { %s3763_s14 = scalar_select %p2850_p3, 1, 0 }
  0x28   : > { %s2344_s24 = sshll.u32 %s2716_s12, 8  ;;  %s2284_s21 = sshll.u32 %s298_s18, 4 }
  0x29   : > { %s2859_s27 = scalar_lea.hbm %s3707_s0, %s2344_s24  ;;  %s302_s19 = scalar_lea.vmem [#allocation2], %s2284_s21 }
  0x2a   : > { %s310_s22 = sshll.u32 %s302_s19, 4  ;;  %p2861_p11 = pnand %p2375_p2, %p42_p13  ;;  %s311_s22 = int_to_ptr.vmem [resolvable:$true] %s310_s22 }
  0x2b   : > { %s299_s25 = scalar_lea.sflag [#allocation3], %s298_s18  ;;  %s2620_s26 = scalar_lea.hbm %s2859_s27, 256 }
  0x2c   : > { %p2621_p5 = scmp.ne.s32.totalorder %s2859_s27, %s2620_s26  ;;  %p2622_p7 = pneg %p2861_p11 }
  0x2d   : > { %s2625_s24 = scalar_lea.hbm %s3707_s0, 512  ;;  %p2626_p10 = scmp.lt.s32.totalorder %s2859_s27, %s3707_s0 }
  0x2e   : > { %p2623_p9 = pnand %p2622_p7, %p2621_p5  ;;  %p2627_p2 = scmp.lt.s32.totalorder %s2625_s24, %s2620_s26 }
  0x30   : > { %p2624_p12 = pneg %p2623_p9  ;;  %p2628_p13 = por %p2627_p2, %p2626_p10 }
  0x32   : > { %p2629_p0 = pnand %p2628_p13, %p2624_p12 }
  0x34   : > { %2632 = shalt.err (!%p2629_p0)
}
  0x35   : > { %s2633_s19 = scalar_lea.vmem %s311_s22, 256  ;;  %s2721_s18 = smov [#allocation2]  }
  0x36   : > { %p2634_p1 = scmp.ne.s32.totalorder %s311_s22, %s2633_s19  ;;  %s2638_s4 = sshll.u32 %s2721_s18, 4  ;;  %s2639_s4 = int_to_ptr.vmem [resolvable:$false] %s2638_s4 }
  0x37   : > { %s2640_s29 = scalar_lea.vmem %s2639_s4, 512  ;;  %p2641_p5 = scmp.lt.s32.totalorder %s311_s22, %s2639_s4 }
  0x38   : > { %p2636_p6 = pnand %p2634_p1, %p2622_p7  ;;  %p2642_p9 = scmp.lt.s32.totalorder %s2640_s29, %s2633_s19 }
  0x3a   : > { %p2637_p3 = pneg %p2636_p6  ;;  %p2643_p4 = por %p2642_p9, %p2641_p5 }
  0x3c   : > { %p2644_p8 = pnand %p2643_p4, %p2637_p3 }
  0x3e   : > { %2647 = shalt.err (!%p2644_p8)
}
  0x3f   : > { %2369 = dma.hbm_to_vmem [thread:$0]  (!%p2861_p11), %s2859_s27, 256, %s311_s22, %s299_s25  }
  0x40   : > { %p3765_p12 = scmp.ne.s32.totalorder %s3757_s17, 0 }
  0x42   : > { %319 = sbr.rel (%p3765_p12) target bundleno = 2090 (0x82a), region = 56 }
  0x47   : > { %s2882_s26 = sand.u32 1, %s2708_s10   ;;  %p3766_p1 = scmp.ne.s32.totalorder %s3754_s15, 0 }
  0x48   : > { %s2288_s16 = sshll.u32 %s2882_s26, 4  ;;  %s322_s4 = scalar_lea.sflag [#allocation3], %s2882_s26 }
  0x49   : > { %s325_s29 = scalar_lea.vmem [#allocation2], %s2288_s16 }
  0x4a   : > { %2691 = dma.done.wait (%p3766_p1), %s322_s4, 256  }
  0x4b   : > { %2693 = vsyncadd (%p3766_p1), %s322_s4, 4294967040  ;;  %p3767_p4 = scmp.eq.s32.totalorder %s2796_s13, 0 }
  0x4d   : > { %2695 = dma.done.wait (%p3767_p4), [#allocation6], 2048   ;;  %p3768_p6 = pmov %p3767_p4 }
  0x4e   : > { %v3724_v0 = vmov 0.0   ;;  %v366_v1 = vld [vmem:[%s3708_s1] sm:$0xff]  ;;  %v365_v2 = vld [vmem:[%s325_s29 + $0x8] sm:$0xff]  ;;  %vm399_vm0 = vcmask 64512   ;;  %s2345_s28 = sshll.u32 %s2796_s13, 8  ;;  %s363_s24 = scalar_lea.vmem [#allocation7], %s2288_s16 }
  0x4f   : > { %2697 = vsyncadd (%p3768_p6), [#allocation6], 4294965248  ;;  %512 = vmatprep.mubr.f32.mxu0 %v3724_v0  ;;  %566 = vmatprep.mubr.f32.mxu1 %v3724_v0  ;;  %v364_v3 = vld [vmem:[%s325_s29] sm:$0xff]  ;;  %s2200_s20 = sshll.u32 %s363_s24, 4  ;;  %s2186_s4 = scalar_lea.sflag [#allocation4], %s2882_s26  ;;  %s2201_s20 = int_to_ptr.vmem [resolvable:$true] %s2200_s20 }
  0x50   : > { %367 = vxpose.xlu0.b32.start.end [1/1] (short) %v366_v1, 128  ;;  %478 = vmatprep.subr.mxu0 %v365_v2  ;;  %v851_v4 = vld [vmem:[%s3710_s3] sm:$0xff]  ;;  %s2648_s29 = scalar_lea.vmem %s2201_s20, 256  ;;  %p3854_p3 = scmp.ne.s32.totalorder %s3763_s14, 0 }
  0x51   : > { %479 = vmatpush1.msra.mxu0 %v364_v3  ;;  %2346 = vmatprep.subr.mxu1 %v365_v2  ;;  %v609_v5 = vld [vmem:[%s3709_s2] sm:$0xff]  ;;  %p2649_p8 = scmp.ne.s32.totalorder %s2201_s20, %s2648_s29  ;;  %s2724_s13 = smov [#allocation7]  }
  0x52   : > { %2347 = vmatpush1.msra.mxu1 %v364_v3  ;;  %962 = vmatprep.subr.mxu0 %v365_v2  ;;  %s2652_s16 = sshll.u32 %s2724_s13, 4  ;;  %s2653_s16 = int_to_ptr.vmem [resolvable:$false] %s2652_s16 }
  0x53   : > { %720 = vmatprep.subr.mxu1 %v365_v2  ;;  %852 = vxpose.xlu1.b32.start.end [1/1] (short) %v851_v4, 128  ;;  %p2650_p11 = pnand %p2649_p8, %p3854_p3  ;;  %s2654_s17 = scalar_lea.vmem %s2653_s16, 512 }
  0x54   : > { %p2655_p10 = scmp.lt.s32.totalorder %s2201_s20, %s2653_s16  ;;  %p2656_p2 = scmp.lt.s32.totalorder %s2654_s17, %s2648_s29 }
  0x55   : > { %p2651_p7 = pneg %p2650_p11 }
  0x56   : > { %p2657_p13 = por %p2656_p2, %p2655_p10 }
  0x58   : > { %p2658_p0 = pnand %p2657_p13, %p2651_p7 }
  0x8d   : > { %610 = vxpose.xlu0.b32.start.end [1/1] (short) %v609_v5, 128 }
  0xcc   : > { %v383_v6 = vpop.trf.xlu0 }
  0xcd   : > { %2291 = vmatmul.mubr.msk.f32.vlgmr.msra.gmra.mxu0 %vm399_vm0, %v383_v6 }
  0xce   : > { %518 = vmatprep.mubr.f32.mxu0 %v3724_v0  ;;  %963 = vmatpush1.msra.mxu0 %v364_v3 }
  0xcf   : > { %v868_v9 = vpop.trf.xlu1 }
  0xd0   : > { %v384_v7 = vpop.trf.xlu0 }
  0xd1   : > { %2292 = vmatmul.mubr.msk.f32.gmra.mxu0 %vm399_vm0, %v384_v7 }
  0xd2   : > { %524 = vmatprep.mubr.f32.mxu0 %v3724_v0 }
  0xd3   : > { %v869_v11 = vpop.trf.xlu1 }
  0xd4   : > { %v385_v8 = vpop.trf.xlu0 }
  0xd5   : > { %2293 = vmatmul.mubr.msk.f32.gmra.mxu0 %vm399_vm0, %v385_v8 }
  0xd6   : > { %530 = vmatprep.mubr.f32.mxu0 %v3724_v0 }
  0xd7   : > { %v870_v13 = vpop.trf.xlu1 }
  0xd8   : > { %v386_v10 = vpop.trf.xlu0 }
  0xd9   : > { %2294 = vmatmul.mubr.msk.f32.gmra.mxu0 %vm399_vm0, %v386_v10 }
  0xda   : > { %536 = vmatprep.mubr.f32.mxu0 %v3724_v0 }
  0xdb   : > { %v871_v15 = vpop.trf.xlu1 }
  0xdc   : > { %v387_v12 = vpop.trf.xlu0 }
  0xdd   : > { %2295 = vmatmul.mubr.msk.f32.gmra.mxu0 %vm399_vm0, %v387_v12 }
  0xde   : > { %542 = vmatprep.mubr.f32.mxu0 %v3724_v0 }
  0xdf   : > { %v872_v18 = vpop.trf.xlu1 }
  0xe0   : > { %v388_v14 = vpop.trf.xlu0 }
  0xe1   : > { %2296 = vmatmul.mubr.msk.f32.gmra.mxu0 %vm399_vm0, %v388_v14 }
  0xe2   : > { %548 = vmatprep.mubr.f32.mxu0 %v3724_v0 }
  0xe3   : > { %v873_v20 = vpop.trf.xlu1 }
  0xe4   : > { %v389_v16 = vpop.trf.xlu0 }
  0xe5   : > { %2297 = vmatmul.mubr.msk.f32.gmra.mxu0 %vm399_vm0, %v389_v16 }
  0xe6   : > { %554 = vmatprep.mubr.f32.mxu0 %v3724_v0 }
  0xe7   : > { %v874_v23 = vpop.trf.xlu1 }
  0xe8   : > { %v390_v17 = vpop.trf.xlu0 }
  0xe9   : > { %2298 = vmatmul.mubr.msk.f32.gmra.mxu0 %vm399_vm0, %v390_v17 }
  0xea   : > { %560 = vmatprep.mubr.f32.mxu0 %v3724_v0 }
  0xeb   : > { %v875_v25 = vpop.trf.xlu1 }
  0xec   : > { %v391_v19 = vpop.trf.xlu0 }
  0xed   : > { %2299 = vmatmul.mubr.msk.f32.gmra.mxu0 %vm399_vm0, %v391_v19 }
  0xee   : > { %996 = vmatprep.mubr.f32.mxu0 %v3724_v0 }
  0xef   : > { %v876_v28 = vpop.trf.xlu1 }
  0xf0   : > { %v392_v21 = vpop.trf.xlu0 }
  0xf1   : > { %2300 = vmatmul.mubr.msk.f32.vlgmr.msra.gmra.mxu1 %vm399_vm0, %v392_v21  ;;  %2323 = vmatmul.mubr.msk.f32.vlgmr.msra.gmra.mxu0 %vm399_vm0, %v868_v9 }
  0xf2   : > { %572 = vmatprep.mubr.f32.mxu1 %v3724_v0  ;;  %721 = vmatpush1.msra.mxu1 %v364_v3 }
  0xf3   : > { %1002 = vmatprep.mubr.f32.mxu0 %v3724_v0  ;;  %v877_v30 = vpop.trf.xlu1 }
  0xf4   : > { %v393_v22 = vpop.trf.xlu0 }
  0xf5   : > { %2301 = vmatmul.mubr.msk.f32.gmra.mxu1 %vm399_vm0, %v393_v22  ;;  %2324 = vmatmul.mubr.msk.f32.gmra.mxu0 %vm399_vm0, %v869_v11 }
  0xf6   : > { %578 = vmatprep.mubr.f32.mxu1 %v3724_v0  ;;  %1008 = vmatprep.mubr.f32.mxu0 %v3724_v0 }
  0xf7   : > { %v878_v33 = vpop.trf.xlu1 }
  0xf8   : > { %v394_v24 = vpop.trf.xlu0 }
  0xf9   : > { %2302 = vmatmul.mubr.msk.f32.gmra.mxu1 %vm399_vm0, %v394_v24  ;;  %2325 = vmatmul.mubr.msk.f32.gmra.mxu0 %vm399_vm0, %v870_v13 }
  0xfa   : > { %584 = vmatprep.mubr.f32.mxu1 %v3724_v0  ;;  %1014 = vmatprep.mubr.f32.mxu0 %v3724_v0 }
  0xfb   : > { %v879_v35 = vpop.trf.xlu1 }
  0xfc   : > { %v395_v26 = vpop.trf.xlu0 }
  0xfd   : > { %2303 = vmatmul.mubr.msk.f32.gmra.mxu1 %vm399_vm0, %v395_v26  ;;  %2326 = vmatmul.mubr.msk.f32.gmra.mxu0 %vm399_vm0, %v871_v15 }
  0xfe   : > { %590 = vmatprep.mubr.f32.mxu1 %v3724_v0  ;;  %1020 = vmatprep.mubr.f32.mxu0 %v3724_v0 }
  0xff   : > { %v880_v38 = vpop.trf.xlu1 }
 0x100   : > { %v396_v27 = vpop.trf.xlu0 }
 0x101   : > { %2304 = vmatmul.mubr.msk.f32.gmra.mxu1 %vm399_vm0, %v396_v27  ;;  %2327 = vmatmul.mubr.msk.f32.gmra.mxu0 %vm399_vm0, %v872_v18 }
 0x102   : > { %596 = vmatprep.mubr.f32.mxu1 %v3724_v0  ;;  %1026 = vmatprep.mubr.f32.mxu0 %v3724_v0 }
 0x103   : > { %v881_v40 = vpop.trf.xlu1 }
 0x104   : > { %v397_v29 = vpop.trf.xlu0 }
 0x105   : > { %2305 = vmatmul.mubr.msk.f32.gmra.mxu1 %vm399_vm0, %v397_v29  ;;  %2328 = vmatmul.mubr.msk.f32.gmra.mxu0 %vm399_vm0, %v873_v20 }
 0x106   : > { %602 = vmatprep.mubr.f32.mxu1 %v3724_v0  ;;  %1032 = vmatprep.mubr.f32.mxu0 %v3724_v0 }
 0x107   : > { %v882_v43 = vpop.trf.xlu1 }
 0x108   : > { %v398_v31 = vpop.trf.xlu0 }
 0x109   : > { %2306 = vmatmul.mubr.msk.f32.gmra.mxu1 %vm399_vm0, %v398_v31  ;;  %2329 = vmatmul.mubr.msk.f32.gmra.mxu0 %vm399_vm0, %v874_v23 }
 0x10a   : > { %754 = vmatprep.mubr.f32.mxu1 %v3724_v0  ;;  %1038 = vmatprep.mubr.f32.mxu0 %v3724_v0 }
 0x10b   : > { %v883_v45 = vpop.trf.xlu1 }
 0x10c   : > { %v626_v32 = vpop.trf.xlu0 }
 0x10d   : > { %2307 = vmatmul.mubr.msk.f32.vlgmr.msra.gmra.mxu1 %vm399_vm0, %v626_v32  ;;  %2330 = vmatmul.mubr.msk.f32.gmra.mxu0 %vm399_vm0, %v875_v25 }
 0x10e   : > { %760 = vmatprep.mubr.f32.mxu1 %v3724_v0  ;;  %1044 = vmatprep.mubr.f32.mxu0 %v3724_v0 }
 0x110   : > { %v627_v34 = vpop.trf.xlu0 }
 0x111   : > { %2308 = vmatmul.mubr.msk.f32.gmra.mxu1 %vm399_vm0, %v627_v34  ;;  %2331 = vmatmul.mubr.msk.f32.gmra.mxu0 %vm399_vm0, %v876_v28 }
 0x112   : > { %766 = vmatprep.mubr.f32.mxu1 %v3724_v0  ;;  %1050 = vmatprep.mubr.f32.mxu0 %v3724_v0 }
 0x114   : > { %v628_v36 = vpop.trf.xlu0 }
 0x115   : > { %2309 = vmatmul.mubr.msk.f32.gmra.mxu1 %vm399_vm0, %v628_v36  ;;  %2332 = vmatmul.mubr.msk.f32.gmra.mxu0 %vm399_vm0, %v877_v30 }
 0x116   : > { %772 = vmatprep.mubr.f32.mxu1 %v3724_v0  ;;  %1056 = vmatprep.mubr.f32.mxu0 %v3724_v0 }
 0x118   : > { %v629_v37 = vpop.trf.xlu0 }
 0x119   : > { %2310 = vmatmul.mubr.msk.f32.gmra.mxu1 %vm399_vm0, %v629_v37  ;;  %2333 = vmatmul.mubr.msk.f32.gmra.mxu0 %vm399_vm0, %v878_v33 }
 0x11a   : > { %778 = vmatprep.mubr.f32.mxu1 %v3724_v0  ;;  %1062 = vmatprep.mubr.f32.mxu0 %v3724_v0 }
 0x11c   : > { %v630_v39 = vpop.trf.xlu0 }
 0x11d   : > { %2311 = vmatmul.mubr.msk.f32.gmra.mxu1 %vm399_vm0, %v630_v39  ;;  %2334 = vmatmul.mubr.msk.f32.gmra.mxu0 %vm399_vm0, %v879_v35 }
 0x11e   : > { %784 = vmatprep.mubr.f32.mxu1 %v3724_v0  ;;  %1068 = vmatprep.mubr.f32.mxu0 %v3724_v0 }
 0x120   : > { %v631_v41 = vpop.trf.xlu0 }
 0x121   : > { %2312 = vmatmul.mubr.msk.f32.gmra.mxu1 %vm399_vm0, %v631_v41  ;;  %2335 = vmatmul.mubr.msk.f32.gmra.mxu0 %vm399_vm0, %v880_v38 }
 0x122   : > { %790 = vmatprep.mubr.f32.mxu1 %v3724_v0  ;;  %1074 = vmatprep.mubr.f32.mxu0 %v3724_v0 }
 0x124   : > { %v632_v42 = vpop.trf.xlu0 }
 0x125   : > { %2313 = vmatmul.mubr.msk.f32.gmra.mxu1 %vm399_vm0, %v632_v42  ;;  %2336 = vmatmul.mubr.msk.f32.gmra.mxu0 %vm399_vm0, %v881_v40 }
 0x126   : > { %796 = vmatprep.mubr.f32.mxu1 %v3724_v0  ;;  %1080 = vmatprep.mubr.f32.mxu0 %v3724_v0 }
 0x128   : > { %v633_v44 = vpop.trf.xlu0 }
 0x129   : > { %2314 = vmatmul.mubr.msk.f32.gmra.mxu1 %vm399_vm0, %v633_v44  ;;  %2337 = vmatmul.mubr.msk.f32.gmra.mxu0 %vm399_vm0, %v882_v43 }
 0x12a   : > { %802 = vmatprep.mubr.f32.mxu1 %v3724_v0  ;;  %1086 = vmatprep.mubr.f32.mxu0 %v3724_v0 }
 0x12c   : > { %v634_v46 = vpop.trf.xlu0 }
 0x12d   : > { %2315 = vmatmul.mubr.msk.f32.gmra.mxu1 %vm399_vm0, %v634_v46  ;;  %2338 = vmatmul.mubr.msk.f32.gmra.mxu0 %vm399_vm0, %v883_v45 }
 0x12e   : > { %808 = vmatprep.mubr.f32.mxu1 %v3724_v0  ;;  %1958 = vmatprep.mubr.f32.mxu0 %v3724_v0 }
 0x130   : > { %v635_v47 = vpop.trf.xlu0 }
 0x131   : > { %2316 = vmatmul.mubr.msk.f32.gmra.mxu1 %vm399_vm0, %v635_v47 }
 0x132   : > { %814 = vmatprep.mubr.f32.mxu1 %v3724_v0 }
 0x134   : > { %v636_v48 = vpop.trf.xlu0 }
 0x135   : > { %2317 = vmatmul.mubr.msk.f32.gmra.mxu1 %vm399_vm0, %v636_v48 }
 0x136   : > { %820 = vmatprep.mubr.f32.mxu1 %v3724_v0 }
 0x138   : > { %v637_v49 = vpop.trf.xlu0 }
 0x139   : > { %2318 = vmatmul.mubr.msk.f32.gmra.mxu1 %vm399_vm0, %v637_v49 }
 0x13a   : > { %826 = vmatprep.mubr.f32.mxu1 %v3724_v0 }
 0x13c   : > { %v638_v50 = vpop.trf.xlu0 }
 0x13d   : > { %2319 = vmatmul.mubr.msk.f32.gmra.mxu1 %vm399_vm0, %v638_v50 }
 0x13e   : > { %832 = vmatprep.mubr.f32.mxu1 %v3724_v0 }
 0x140   : > { %v639_v51 = vpop.trf.xlu0 }
 0x141   : > { %2320 = vmatmul.mubr.msk.f32.gmra.mxu1 %vm399_vm0, %v639_v51 }
 0x142   : > { %838 = vmatprep.mubr.f32.mxu1 %v3724_v0 }
 0x144   : > { %v640_v52 = vpop.trf.xlu0 }
 0x145   : > { %2321 = vmatmul.mubr.msk.f32.gmra.mxu1 %vm399_vm0, %v640_v52 }
 0x146   : > { %844 = vmatprep.mubr.f32.mxu1 %v3724_v0 }
 0x148   : > { %v641_v53 = vpop.trf.xlu0 }
 0x149   : > { %2322 = vmatmul.mubr.msk.f32.gmra.mxu1 %vm399_vm0, %v641_v53 }
 0x18d   : > { %v514_v54 = vpop.f32.mrf.mxu0 }
 0x18f   : > { %v516_v55 = vpop.f32.mrf.mxu0 }
 0x191   : > { %v520_v56 = vpop.f32.mrf.mxu0 }
 0x192   : > { %v1381_v57 = vmax.f32 %v514_v54, %v520_v56 }
 0x193   : > { %v522_v58 = vpop.f32.mrf.mxu0 }
 0x194   : > { %v1390_v59 = vmax.f32 %v516_v55, %v522_v58 }
 0x195   : > { %v526_v60 = vpop.f32.mrf.mxu0 }
 0x196   : > { %v1382_v61 = vmax.f32 %v1381_v57, %v526_v60 }
 0x197   : > { %v528_v62 = vpop.f32.mrf.mxu0 }
 0x198   : > { %v1391_v63 = vmax.f32 %v1390_v59, %v528_v62 }
 0x199   : > { %v532_v1 = vpop.f32.mrf.mxu0 }
 0x19a   : > { %v1383_v2 = vmax.f32 %v1382_v61, %v532_v1 }
 0x19b   : > { %v534_v3 = vpop.f32.mrf.mxu0 }
 0x19c   : > { %v1384_v4 = vrot.slane %v1383_v2, 4  ;;  %v1392_v5 = vmax.f32 %v1391_v63, %v534_v3 }
 0x19d   : > { %v3002_v6 = vpop.f32.mrf.mxu0 }
 0x19e   : > { %v1385_v7 = vmax.f32 %v1383_v2, %v1384_v4  ;;  %v1393_v8 = vrot.slane %v1392_v5, 4 }
 0x19f   : > { %v3004_v9 = vpop.f32.mrf.mxu0 }
 0x1a0   : > { %v1386_v10 = vrot.slane %v1385_v7, 2  ;;  %v1394_v11 = vmax.f32 %v1392_v5, %v1393_v8 }
 0x1a1   : > { %v3006_v12 = vpop.f32.mrf.mxu0 }
 0x1a2   : > { %v1387_v13 = vmax.f32 %v1385_v7, %v1386_v10  ;;  %v1395_v14 = vrot.slane %v1394_v11, 2  ;;  %v1399_v18 = vmax.f32 %v3002_v6, %v3006_v12 }
 0x1a3   : > { %v3008_v15 = vpop.f32.mrf.mxu0 }
 0x1a4   : > { %v1388_v16 = vrot.slane %v1387_v13, 1  ;;  %v1396_v17 = vmax.f32 %v1394_v11, %v1395_v14  ;;  %v1408_v22 = vmax.f32 %v3004_v9, %v3008_v15 }
 0x1a5   : > { %v3012_v19 = vpop.f32.mrf.mxu0 }
 0x1a6   : > { %v1389_v20 = vmax.f32 %v1387_v13, %v1388_v16  ;;  %v1397_v21 = vrot.slane %v1396_v17, 1  ;;  %v1400_v23 = vmax.f32 %v1399_v18, %v3012_v19 }
 0x1a7   : > { %v3017_v24 = vpop.f32.mrf.mxu0 }
 0x1a8   : > { %v1453_v25 = vsub.f32 %v514_v54, %v1389_v20  ;;  %v1455_v26 = vsub.f32 %v520_v56, %v1389_v20  ;;  %v1457_v27 = vsub.f32 %v526_v60, %v1389_v20  ;;  %v1459_v28 = vsub.f32 %v532_v1, %v1389_v20 }
 0x1a9   : > { %v1398_v29 = vmax.f32 %v1396_v17, %v1397_v21  ;;  %v1409_v30 = vmax.f32 %v1408_v22, %v3017_v24  ;;  %v3020_v31 = vpop.f32.mrf.mxu0 }
 0x1aa   : > { %v1485_v32 = vmul.f32 1.442695, %v1453_v25  ;;  %v1489_v33 = vmul.f32 1.442695, %v1455_v26  ;;  %v1493_v34 = vmul.f32 1.442695, %v1457_v27  ;;  %v1401_v35 = vmax.f32 %v1400_v23, %v3020_v31 }
 0x1ab   : > { %v1497_v36 = vmul.f32 1.442695, %v1459_v28  ;;  %v1454_v37 = vsub.f32 %v516_v55, %v1398_v29  ;;  %v1456_v38 = vsub.f32 %v522_v58, %v1398_v29  ;;  %v1458_v39 = vsub.f32 %v528_v62, %v1398_v29  ;;  %v3023_v40 = vpop.f32.mrf.mxu0 }
 0x1ac   : > { %2416 = vpow2.f32 %v1485_v32  ;;  %v1460_v41 = vsub.f32 %v534_v3, %v1398_v29  ;;  %v1402_v42 = vrot.slane %v1401_v35, 4  ;;  %v1410_v43 = vmax.f32 %v1409_v30, %v3023_v40 }
 0x1ad   : > { %2418 = vpow2.f32 %v1489_v33  ;;  %v1487_v44 = vmul.f32 1.442695, %v1454_v37  ;;  %v1491_v45 = vmul.f32 1.442695, %v1456_v38  ;;  %v3026_v46 = vpop.f32.mrf.mxu0  ;;  %v1495_v49 = vmul.f32 1.442695, %v1458_v39 }
 0x1ae   : > { %2420 = vpow2.f32 %v1493_v34  ;;  %v1403_v47 = vmax.f32 %v1401_v35, %v1402_v42  ;;  %v1411_v48 = vrot.slane %v1410_v43, 4  ;;  %v1499_v53 = vmul.f32 1.442695, %v1460_v41 }
 0x1af   : > { %2422 = vpow2.f32 %v1497_v36  ;;  %v3028_v50 = vpop.f32.mrf.mxu0 }
 0x1b0   : > { %2424 = vpow2.f32 %v1487_v44  ;;  %v1404_v51 = vrot.slane %v1403_v47, 2  ;;  %v1412_v52 = vmax.f32 %v1410_v43, %v1411_v48 }
 0x1b1   : > { %2426 = vpow2.f32 %v1491_v45  ;;  %v3030_v54 = vpop.f32.mrf.mxu1  ;;  %v3032_v55 = vpop.f32.mrf.mxu0 }
 0x1b2   : > { %3769 = vst [vmem:[#allocation14_spill] sm:$0xff] %v3032_v55  ;;  %v1405_v56 = vmax.f32 %v1403_v47, %v1404_v51  ;;  %v1413_v57 = vrot.slane %v1412_v52, 2  ;;  %2428 = vpow2.f32 %v1495_v49  ;;  %v1417_v62 = vmax.f32 %v3026_v46, %v3030_v54 }
 0x1b3   : > { %v3034_v58 = vpop.f32.mrf.mxu1  ;;  %v3036_v59 = vpop.f32.mrf.mxu0  ;;  %2430 = vpow2.f32 %v1499_v53 }
 0x1b4   : > { %3770 = vst [vmem:[#allocation15_spill] sm:$0xff] %v3036_v59  ;;  %v1406_v60 = vrot.slane %v1405_v56, 1  ;;  %v1414_v61 = vmax.f32 %v1412_v52, %v1413_v57  ;;  %v1426_v4 = vmax.f32 %v3028_v50, %v3034_v58 }
 0x1b5   : > { %v3040_v63 = vpop.f32.mrf.mxu1  ;;  %v3042_v1 = vpop.f32.mrf.mxu0 }
 0x1b6   : > { %3771 = vst [vmem:[#allocation16_spill] sm:$0xff] %v3042_v1  ;;  %v1407_v2 = vmax.f32 %v1405_v56, %v1406_v60  ;;  %v1415_v3 = vrot.slane %v1414_v61, 1  ;;  %v1418_v5 = vmax.f32 %v1417_v62, %v3040_v63 }
 0x1b7   : > { %v3047_v7 = vpop.f32.mrf.mxu1  ;;  %v3049_v8 = vpop.f32.mrf.mxu0 }
 0x1b8   : > { %3772 = vst [vmem:[#allocation17_spill] sm:$0xff] %v3049_v8  ;;  %v1461_v10 = vsub.f32 %v3002_v6, %v1407_v2  ;;  %v1463_v11 = vsub.f32 %v3006_v12, %v1407_v2  ;;  %v1465_v13 = vsub.f32 %v3012_v19, %v1407_v2  ;;  %v1467_v14 = vsub.f32 %v3020_v31, %v1407_v2 }
 0x1b9   : > { %v3055_v16 = vpop.eup %2416  ;;  %v1416_v17 = vmax.f32 %v1414_v61, %v1415_v3  ;;  %v1427_v18 = vmax.f32 %v1426_v4, %v3047_v7  ;;  %v3058_v20 = vpop.f32.mrf.mxu1 }
 0x1ba   : > { %v3060_v21 = vpop.f32.mrf.mxu0  ;;  %v3062_v22 = vpop.eup %2418  ;;  %v1501_v23 = vmul.f32 1.442695, %v1461_v10  ;;  %v1505_v25 = vmul.f32 1.442695, %v1463_v11  ;;  %v1509_v6 = vmul.f32 1.442695, %v1465_v13  ;;  %v1419_v12 = vmax.f32 %v1418_v5, %v3058_v20 }
 0x1bb   : > { %3773 = vst [vmem:[#allocation18_spill] sm:$0xff] %v3060_v21  ;;  %v3065_v26 = vpop.eup %2420  ;;  %v1549_v19 = vadd.f32 %v3062_v22, %v3055_v16  ;;  %v1513_v27 = vmul.f32 1.442695, %v1467_v14  ;;  %v1462_v28 = vsub.f32 %v3004_v9, %v1416_v17  ;;  %v1464_v29 = vsub.f32 %v3008_v15, %v1416_v17  ;;  %v3071_v30 = vpop.f32.mrf.mxu1 }
 0x1bc   : > { %v3073_v31 = vpop.f32.mrf.mxu0  ;;  %v3075_v32 = vpop.eup %2422  ;;  %2432 = vpow2.f32 %v1501_v23  ;;  %v1466_v33 = vsub.f32 %v3017_v24, %v1416_v17  ;;  %v1468_v34 = vsub.f32 %v3023_v40, %v1416_v17  ;;  %v1420_v35 = vrot.slane %v1419_v12, 4 }
 0x1bd   : > { %3774 = vst [vmem:[#allocation19_spill] sm:$0xff] %v3073_v31  ;;  %v3079_v36 = vpop.eup %2424  ;;  %v1550_v37 = vadd.f32 %v3065_v26, %v1549_v19  ;;  %2434 = vpow2.f32 %v1505_v25  ;;  %v1503_v9 = vmul.f32 1.442695, %v1462_v28  ;;  %v1507_v38 = vmul.f32 1.442695, %v1464_v29  ;;  %v3082_v15 = vpop.f32.mrf.mxu1 }
 0x1be   : > { %v3084_v39 = vpop.f32.mrf.mxu0  ;;  %v3086_v41 = vpop.eup %2426  ;;  %2436 = vpow2.f32 %v1509_v6  ;;  %v1511_v42 = vmul.f32 1.442695, %v1466_v33  ;;  %v1421_v43 = vmax.f32 %v1419_v12, %v1420_v35  ;;  %v1428_v44 = vmax.f32 %v1427_v18, %v3071_v30 }
 0x1bf   : > { %3775 = vst [vmem:[#allocation20_spill] sm:$0xff] %v3084_v39  ;;  %v1551_v24 = vadd.f32 %v3075_v32, %v1550_v37  ;;  %v1558_v40 = vadd.f32 %v3086_v41, %v3079_v36  ;;  %2438 = vpow2.f32 %v1513_v27  ;;  %v3092_v45 = vpop.f32.mrf.mxu1  ;;  %v3096_v48 = vpop.eup %2428  ;;  %v1515_v49 = vmul.f32 1.442695, %v1468_v34 }
 0x1c0   : > { %v3094_v47 = vpop.f32.mrf.mxu0  ;;  %2440 = vpow2.f32 %v1503_v9  ;;  %v1422_v51 = vrot.slane %v1421_v43, 2  ;;  %v1429_v56 = vrot.slane %v1428_v44, 4  ;;  %v3103_v61 = vpop.eup %2430 }
 0x1c1   : > { %v1552_v52 = vrot.slane %v1551_v24, 4  ;;  %v1559_v53 = vadd.f32 %v3096_v48, %v1558_v40  ;;  %2442 = vpow2.f32 %v1507_v38  ;;  %v3099_v57 = vpop.f32.mrf.mxu1 }
 0x1c2   : > { %v3101_v60 = vpop.f32.mrf.mxu0  ;;  %v1423_v62 = vmax.f32 %v1421_v43, %v1422_v51  ;;  %2444 = vpow2.f32 %v1511_v42  ;;  %v1430_v4 = vmax.f32 %v1428_v44, %v1429_v56  ;;  %v1435_v6 = vmax.f32 %v3082_v15, %v3099_v57 }
 0x1c3   : > { %v1553_v2 = vadd.f32 %v1552_v52, %v1551_v24  ;;  %v1560_v3 = vadd.f32 %v3103_v61, %v1559_v53  ;;  %v3106_v5 = vpop.f32.mrf.mxu1  ;;  %2446 = vpow2.f32 %v1515_v49 }
 0x1c4   : > { %v3108_v10 = vpop.f32.mrf.mxu0  ;;  %v1424_v11 = vrot.slane %v1423_v62, 1  ;;  %v1431_v17 = vrot.slane %v1430_v4, 2  ;;  %v1444_v42 = vmax.f32 %v3092_v45, %v3106_v5 }
 0x1c5   : > { %v1554_v13 = vrot.slane %v1553_v2, 2  ;;  %v1561_v14 = vrot.slane %v1560_v3, 4  ;;  %v3110_v18 = vpop.f32.mrf.mxu1 }
 0x1c6   : > { %v3112_v23 = vpop.f32.mrf.mxu0  ;;  %v3114_v25 = vmax.f32 %v1423_v62, %v1424_v11  ;;  %v1432_v27 = vmax.f32 %v1430_v4, %v1431_v17  ;;  %v1436_v37 = vmax.f32 %v1435_v6, %v3110_v18 }
 0x1c7   : > { %v1555_v12 = vadd.f32 %v1554_v13, %v1553_v2  ;;  %v1562_v19 = vadd.f32 %v1561_v14, %v1560_v3  ;;  %v3118_v28 = vpop.f32.mrf.mxu1 }
 0x1c8   : > { %v3120_v29 = vpop.f32.mrf.mxu0  ;;  %v1469_v33 = vsub.f32 %v3026_v46, %v3114_v25  ;;  %v1471_v34 = vsub.f32 %v3030_v54, %v3114_v25  ;;  %v1473_v35 = vsub.f32 %v3040_v63, %v3114_v25  ;;  %v1433_v38 = vrot.slane %v1432_v27, 1 }
 0x1c9   : > { %v3129_v9 = vpop.eup %2432  ;;  %v3133_v43 = vpop.f32.mrf.mxu1  ;;  %v1563_v24 = vrot.slane %v1562_v19, 2  ;;  %v1556_v63 = vrot.slane %v1555_v12, 1  ;;  %v1475_v53 = vsub.f32 %v3058_v20, %v3114_v25  ;;  %v1445_v62 = vmax.f32 %v1444_v42, %v3118_v28 }
 0x1ca   : > { %v3135_v40 = vpop.f32.mrf.mxu0  ;;  %v3137_v46 = vpop.eup %2434  ;;  %v1517_v44 = vmul.f32 1.442695, %v1469_v33  ;;  %v1521_v54 = vmul.f32 1.442695, %v1471_v34  ;;  %v1437_v49 = vmax.f32 %v1436_v37, %v3133_v43  ;;  %v1434_v56 = vmax.f32 %v1432_v27, %v1433_v38 }
 0x1cb   : > { %v3140_v51 = vpop.eup %2436  ;;  %v1567_v52 = vadd.f32 %v3137_v46, %v3129_v9  ;;  %v3147_v2 = vpop.f32.mrf.mxu1  ;;  %v1525_v11 = vmul.f32 1.442695, %v1473_v35  ;;  %v1564_v14 = vadd.f32 %v1563_v24, %v1562_v19  ;;  %v3166_v38 = vadd.f32 %v1556_v63, %v1555_v12 }
 0x1cc   : > { %v3149_v3 = vpop.f32.mrf.mxu0  ;;  %v3151_v4 = vpop.eup %2438  ;;  %2448 = vpow2.f32 %v1517_v44  ;;  %v1438_v13 = vrot.slane %v1437_v49, 4  ;;  %v1470_v33 = vsub.f32 %v3028_v50, %v1434_v56  ;;  %v1472_v20 = vsub.f32 %v3034_v58, %v1434_v56 }
 0x1cd   : > { %v3153_v17 = vpop.eup %2440  ;;  %v1568_v6 = vadd.f32 %v3140_v51, %v1567_v52  ;;  %v1446_v25 = vmax.f32 %v1445_v62, %v3147_v2  ;;  %v3159_v27 = vpop.f32.mrf.mxu1  ;;  %2450 = vpow2.f32 %v1521_v54  ;;  %v1474_v35 = vsub.f32 %v3047_v7, %v1434_v56 }
 0x1ce   : > { %3776 = vst [vmem:[#allocation21_spill] sm:$0xff] %v3159_v27  ;;  %v3161_v34 = vpop.f32.mrf.mxu0  ;;  %v3163_v37 = vpop.eup %2442  ;;  %v1439_v19 = vmax.f32 %v1437_v49, %v1438_v13  ;;  %v1476_v58 = vsub.f32 %v3071_v30, %v1434_v56  ;;  %v1519_v24 = vmul.f32 1.442695, %v1470_v33  ;;  %2452 = vpow2.f32 %v1525_v11 }
 0x1cf   : > { %v1569_v42 = vadd.f32 %v3151_v4, %v1568_v6  ;;  %v1576_v50 = vadd.f32 %v3163_v37, %v3153_v17  ;;  %v3172_v44 = vpop.f32.mrf.mxu1  ;;  %v3176_v62 = vpop.eup %2444  ;;  %v1523_v54 = vmul.f32 1.442695, %v1472_v20  ;;  %v1527_v7 = vmul.f32 1.442695, %v1474_v35 }
 0x1d0   : > { %3777 = vst [vmem:[#allocation22_spill] sm:$0xff] %v3172_v44  ;;  %v3174_v52 = vpop.f32.mrf.mxu0  ;;  %v1093_v12 = vmax.f32 %v3159_v27, %v3172_v44  ;;  %2454 = vpow2.f32 %v1519_v24  ;;  %v1440_v13 = vrot.slane %v1439_v19, 2  ;;  %v3185_v56 = vpop.eup %2446  ;;  %v1529_v33 = vmul.f32 1.442695, %v1475_v53 }
 0x1d1   : > { %v1570_v49 = vrot.slane %v1569_v42, 4  ;;  %v1577_v63 = vadd.f32 %v3176_v62, %v1576_v50  ;;  %v3181_v6 = vpop.f32.mrf.mxu1  ;;  %2456 = vpow2.f32 %v1523_v54  ;;  %v1447_v0 = vrot.slane %v1446_v25, 4 }
 0x1d2   : > { %3778 = vst [vmem:[#allocation23_spill] sm:$0xff] %v3181_v6  ;;  %v3183_v30 = vpop.f32.mrf.mxu0  ;;  %1094 = vmax.xlane.f32.xlu1 %v1093_v12  ;;  %v1565_v11 = vrot.slane %v1564_v14, 1  ;;  %v1531_v44 = vmul.f32 1.442695, %v1476_v58  ;;  %v1441_v27 = vmax.f32 %v1439_v19, %v1440_v13  ;;  %2458 = vpow2.f32 %v1527_v7 }
 0x1d3   : > { %v1571_v20 = vadd.f32 %v1570_v49, %v1569_v42  ;;  %v1578_v35 = vadd.f32 %v3185_v56, %v1577_v63  ;;  %v3188_v55 = vpop.f32.mrf.mxu1  ;;  %v1448_v24 = vmax.f32 %v1446_v25, %v1447_v0  ;;  %2460 = vrcp.f32 %v3166_v38 }
 0x1d4   : > { %3779 = vst [vmem:[#allocation24_spill] sm:$0xff] %v3188_v55  ;;  %v3190_v50 = vpop.f32.mrf.mxu0  ;;  %v1096_v59 = vmax.f32 %v3181_v6, %v3188_v55  ;;  %v3194_v1 = vadd.f32 %v1565_v11, %v1564_v14  ;;  %v1442_v54 = vrot.slane %v1441_v27, 1 }
 0x1d5   : > { %v1579_v53 = vrot.slane %v1578_v35, 4  ;;  %v3196_v12 = vpop.f32.mrf.mxu1  ;;  %v1449_v19 = vrot.slane %v1448_v24, 2  ;;  %v1572_v58 = vrot.slane %v1571_v20, 2 }
 0x1d6   : > { %3780 = vst [vmem:[#allocation25_spill] sm:$0xff] %v3196_v12  ;;  %v3199_v42 = vpop.f32.mrf.mxu0  ;;  %1097 = vmax.xlane.f32.xlu0 %v1096_v59  ;;  %2462 = vrcp.f32 %v3194_v1  ;;  %v1443_v0 = vmax.f32 %v1441_v27, %v1442_v54 }
 0x1d7   : > { %v1580_v7 = vadd.f32 %v1579_v53, %v1578_v35  ;;  %2464 = vpow2.f32 %v1531_v44  ;;  %v3202_v25 = vpop.f32.mrf.mxu1  ;;  %v1450_v49 = vmax.f32 %v1448_v24, %v1449_v19  ;;  %v1573_v54 = vadd.f32 %v1572_v58, %v1571_v20 }
 0x1d8   : > { %3781 = vst [vmem:[#allocation26_spill] sm:$0xff] %v3202_v25  ;;  %v3204_v14 = vpop.f32.mrf.mxu0  ;;  %2466 = vpow2.f32 %v1529_v33  ;;  %v1099_v63 = vmax.f32 %v3196_v12, %v3202_v25  ;;  %v1477_v11 = vsub.f32 %v3082_v15, %v1443_v0  ;;  %v1479_v59 = vsub.f32 %v3099_v57, %v1443_v0 }
 0x1d9   : > { %v3208_v13 = vpop.eup %2448  ;;  %v1481_v55 = vsub.f32 %v3110_v18, %v1443_v0  ;;  %v1483_v44 = vsub.f32 %v3133_v43, %v1443_v0  ;;  %v3214_v27 = vpop.f32.mrf.mxu1  ;;  %v1451_v53 = vrot.slane %v1450_v49, 1  ;;  %v1581_v33 = vrot.slane %v1580_v7, 2 }
 0x1da   : > { %3782 = vst [vmem:[#allocation27_spill] sm:$0xff] %v3208_v13  ;;  %3783 = vst [vmem:[#allocation28_spill] sm:$0xff] %v3214_v27  ;;  %v3216_v35 = vpop.f32.mrf.mxu0  ;;  %1100 = vmax.xlane.f32.xlu1 %v1099_v63  ;;  %v3218_v24 = vpop.eup %2450  ;;  %v1533_v19 = vmul.f32 1.442695, %v1477_v11  ;;  %v1537_v25 = vmul.f32 1.442695, %v1479_v59 }
 0x1db   : > { %3784 = vst [vmem:[#allocation29_spill] sm:$0xff] %v3218_v24  ;;  %v3220_v12 = vpop.f32.mrf.mxu1  ;;  %v1541_v57 = vmul.f32 1.442695, %v1481_v55  ;;  %v1452_v18 = vmax.f32 %v1450_v49, %v1451_v53  ;;  %v1582_v0 = vadd.f32 %v1581_v33, %v1580_v7  ;;  %v3226_v6 = vpop.eup %2452  ;;  %v1545_v63 = vmul.f32 1.442695, %v1483_v44 }
 0x1dc   : > { %3785 = vst [vmem:[#allocation30_spill] sm:$0xff] %v3220_v12  ;;  %v3222_v15 = vpop.f32.mrf.mxu0  ;;  %v1102_v43 = vmax.f32 %v3214_v27, %v3220_v12  ;;  %3786 = vst [vmem:[#allocation31_spill] sm:$0xff] %v3226_v6  ;;  %2468 = vpow2.f32 %v1533_v19  ;;  %v1585_v7 = vadd.f32 %v3218_v24, %v3208_v13  ;;  %v1574_v33 = vrot.slane %v1573_v54, 1 }
 0x1dd   : > { %v3228_v8 = vpop.f32.mrf.mxu1  ;;  %v3232_v20 = vpop.eup %2454  ;;  %2470 = vpow2.f32 %v1537_v25  ;;  %v1478_v58 = vsub.f32 %v3092_v45, %v1452_v18  ;;  %v1480_v55 = vsub.f32 %v3106_v5, %v1452_v18  ;;  %v1482_v49 = vsub.f32 %v3118_v28, %v1452_v18 }
 0x1de   : > { %3787 = vst [vmem:[#allocation32_spill] sm:$0xff] %v3228_v8  ;;  %v3230_v21 = vpop.f32.mrf.mxu0  ;;  %3788 = vst [vmem:[#allocation33_spill] sm:$0xff] %v3232_v20  ;;  %1103 = vmax.xlane.f32.xlu1 %v1102_v43  ;;  %v3237_v11 = vpop.eup %2456  ;;  %v1484_v59 = vsub.f32 %v3147_v2, %v1452_v18  ;;  %v1583_v53 = vrot.slane %v1582_v0, 1  ;;  %2472 = vpow2.f32 %v1541_v57 }
 0x1df   : > { %3789 = vst [vmem:[#allocation34_spill] sm:$0xff] %v3237_v11  ;;  %v3242_v44 = vpop.f32.mrf.mxu1  ;;  %v1594_v45 = vadd.f32 %v3237_v11, %v3232_v20  ;;  %v1535_v5 = vmul.f32 1.442695, %v1478_v58  ;;  %v1539_v28 = vmul.f32 1.442695, %v1480_v55  ;;  %v3248_v25 = vpop.eup %2458  ;;  %2474 = vpow2.f32 %v1545_v63 }
 0x1e0   : > { %3790 = vst [vmem:[#allocation35_spill] sm:$0xff] %v3242_v44  ;;  %v3244_v19 = vpop.f32.mrf.mxu0  ;;  %3791 = vst [vmem:[#allocation36_spill] sm:$0xff] %v3248_v25  ;;  %v1543_v43 = vmul.f32 1.442695, %v1482_v49  ;;  %v1547_v12 = vmul.f32 1.442695, %v1484_v59  ;;  %v1105_v2 = vmax.f32 %v3228_v8, %v3242_v44  ;;  %v2461_v13 = vpop.eup %2460  ;;  %v3257_v20 = vadd.f32 %v1583_v53, %v1582_v0 }
 0x1e1   : > { %v3250_v27 = vpop.f32.mrf.mxu1  ;;  %v1595_v24 = vadd.f32 %v3248_v25, %v1594_v45  ;;  %2476 = vpow2.f32 %v1535_v5  ;;  %v1586_v58 = vadd.f32 %v3226_v6, %v1585_v7  ;;  %v3262_v55 = vadd.f32 %v1574_v33, %v1573_v54 }
 0x1e2   : > { %3792 = vst [vmem:[#allocation37_spill] sm:$0xff] %v3250_v27  ;;  %v3254_v18 = vpop.f32.mrf.mxu0  ;;  %2478 = vpow2.f32 %v1539_v28  ;;  %1106 = vmax.xlane.f32.xlu1 %v1105_v2  ;;  %v1629_v49 = vmul.f32 %v2461_v13, %v3166_v38 }
 0x1e3   : > { %v2463_v57 = vpop.eup %2462  ;;  %v3260_v63 = vpop.f32.mrf.mxu1  ;;  %2480 = vpow2.f32 %v1543_v43 }
 0x1e4   : > { %3793 = vst [vmem:[#allocation38_spill] sm:$0xff] %v3260_v63  ;;  %v3265_v59 = vpop.f32.mrf.mxu0  ;;  %v3267_v44 = vpop.eup %2464  ;;  %v1108_v0 = vmax.f32 %v3250_v27, %v3260_v63  ;;  %v1630_v53 = vmul.f32 %v2463_v57, %v3194_v1  ;;  %2482 = vpow2.f32 %v1547_v12  ;;  %v1637_v54 = vsub.f32 2.0, %v1629_v49 }
 0x1e5   : > { %v3272_v45 = vpop.eup %2466  ;;  %v1596_v7 = vadd.f32 %v3267_v44, %v1595_v24  ;;  %v3275_v5 = vpop.f32.mrf.mxu1  ;;  %2484 = vrcp.f32 %v3257_v20 }
 0x1e6   : > { %3794 = vst [vmem:[#allocation39_spill] sm:$0xff] %v3272_v45  ;;  %3795 = vst [vmem:[#allocation40_spill] sm:$0xff] %v3275_v5  ;;  %v3277_v33 = vpop.f32.mrf.mxu0  ;;  %v1638_v38 = vsub.f32 2.0, %v1630_v53  ;;  %v1587_v28 = vadd.f32 %v3272_v45, %v1586_v58  ;;  %1109 = vmax.xlane.f32.xlu1 %v1108_v0  ;;  %2486 = vrcp.f32 %v3262_v55  ;;  %v1645_v1 = vmul.f32 %v2461_v13, %v1637_v54 }
 0x1e7   : > { %v3281_v43 = vpop.f32.mrf.mxu1  ;;  %v1597_v63 = vrot.slane %v1596_v7, 4 }
 0x1e8   : > { %3796 = vst [vmem:[#allocation41_spill] sm:$0xff] %v3281_v43  ;;  %v1078_v2 = vpop.f32.mrf.mxu0  ;;  %v1111_v12 = vmax.f32 %v3275_v5, %v3281_v43  ;;  %v1646_v24 = vmul.f32 %v2463_v57, %v1638_v38  ;;  %v3289_v27 = vmul.f32 %v3075_v32, %v1645_v1  ;;  %v3292_v53 = vmul.f32 %v3065_v26, %v1645_v1 }
 0x1e9   : > { %v3286_v49 = vpop.f32.mrf.mxu1  ;;  %v3295_v58 = vmul.f32 %v3062_v22, %v1645_v1  ;;  %v3297_v8 = vpop.eup %2468  ;;  %v1588_v38 = vrot.slane %v1587_v28, 4  ;;  %v3316_v43 = vmul.f32 %v3055_v16, %v1645_v1 }
 0x1ea   : > { %3797 = vst [vmem:[#allocation42_spill] sm:$0xff] %v3286_v49  ;;  %3798 = vst [vmem:[#allocation43_spill] sm:$0xff] %v3289_v27  ;;  %v1082_v0 = vpop.f32.mrf.mxu0  ;;  %v3300_v13 = vmul.f32 %v3103_v61, %v1646_v24  ;;  %v3303_v57 = vmul.f32 %v3096_v48, %v1646_v24  ;;  %v3306_v54 = vmul.f32 %v3086_v41, %v1646_v24  ;;  %v3308_v32 = vpop.eup %2470  ;;  %1112 = vmax.xlane.f32.xlu1 %v1111_v12 }
 0x1eb   : > { %3799 = vst [vmem:[#allocation44_spill] sm:$0xff] %v3292_v53  ;;  %3800 = vst [vmem:[#allocation45_spill] sm:$0xff] %v3295_v58  ;;  %v3310_v26 = vpop.f32.mrf.mxu1  ;;  %v3313_v22 = vmul.f32 %v3079_v36, %v1646_v24  ;;  %v1603_v48 = vadd.f32 %v3308_v32, %v3297_v8  ;;  %v3322_v5 = vpop.eup %2472  ;;  %v1598_v58 = vadd.f32 %v1597_v63, %v1596_v7 }
 0x1ec   : > { %3801 = vst [vmem:[#allocation46_spill] sm:$0xff] %v3300_v13  ;;  %3802 = vst [vmem:[#allocation47_spill] sm:$0xff] %v3303_v57  ;;  %v1084_v61 = vpop.f32.mrf.mxu0  ;;  %v1114_v41 = vmax.f32 %v3286_v49, %v3310_v26  ;;  %v3326_v53 = vpop.eup %2474  ;;  %v1589_v16 = vadd.f32 %v1588_v38, %v1587_v28 }
 0x1ed   : > { %3803 = vst [vmem:[#allocation48_spill] sm:$0xff] %v3306_v54  ;;  %3804 = vst [vmem:[#allocation49_spill] sm:$0xff] %v3310_v26  ;;  %v3324_v54 = vpop.f32.mrf.mxu1  ;;  %v1604_v36 = vadd.f32 %v3322_v5, %v1603_v48  ;;  %v1599_v28 = vrot.slane %v1598_v58, 2 }
 0x1ee   : > { %3805 = vst [vmem:[#allocation50_spill] sm:$0xff] %v3313_v22  ;;  %3806 = vst [vmem:[#allocation51_spill] sm:$0xff] %v3316_v43  ;;  %v1088_v12 = vpop.f32.mrf.mxu0  ;;  %v3329_v24 = vpop.eup %2476  ;;  %1115 = vmax.xlane.f32.xlu1 %v1114_v41  ;;  %v1590_v27 = vrot.slane %v1589_v16, 2 }
 0x1ef   : > { %3807 = vst [vmem:[#allocation52_spill] sm:$0xff] %v3324_v54  ;;  %v3331_v1 = vpop.f32.mrf.mxu1  ;;  %v3333_v22 = vpop.eup %2478  ;;  %v1605_v26 = vadd.f32 %v3326_v53, %v1604_v36  ;;  %v1600_v6 = vadd.f32 %v1599_v28, %v1598_v58 }
 0x1f0   : > { %3808 = vst [vmem:[#allocation53_spill] sm:$0xff] %v3331_v1  ;;  %v1090_v43 = vpop.f32.mrf.mxu0  ;;  %v1117_v63 = vmax.f32 %v3324_v54, %v3331_v1  ;;  %v3338_v7 = vpop.eup %2480  ;;  %v1612_v48 = vadd.f32 %v3333_v22, %v3329_v24 }
 0x1f1   : > { %1685 = vmatprep.subr.mxu1 %v1090_v43  ;;  %v3342_v49 = vpop.f32.mrf.mxu1  ;;  %v3344_v38 = vpop.eup %2482  ;;  %v1606_v41 = vrot.slane %v1605_v26, 4  ;;  %v1601_v58 = vrot.slane %v1600_v6, 1 }
 0x1f2   : > { %3809 = vst [vmem:[#allocation54_spill] sm:$0xff] %v3342_v49  ;;  %1686 = vmatpush1.xpose.msra.mxu1 %v1088_v12  ;;  %v2485_v57 = vpop.eup %2484  ;;  %v1613_v36 = vadd.f32 %v3338_v7, %v1612_v48  ;;  %1118 = vmax.xlane.f32.xlu1 %v1117_v63  ;;  %v1591_v63 = vadd.f32 %v1590_v27, %v1589_v16 }
 0x1f3   : > { %1687 = vmatprep.subr.mxu1 %v1084_v61  ;;  %v3347_v1 = vpop.f32.mrf.mxu1  ;;  %v2487_v43 = vpop.eup %2486  ;;  %v1607_v54 = vadd.f32 %v1606_v41, %v1605_v26  ;;  %v1632_v11 = vmul.f32 %v2485_v57, %v3257_v20 }
 0x1f4   : > { %3810 = vst [vmem:[#allocation55_spill] sm:$0xff] %v3347_v1  ;;  %v1120_v13 = vmax.f32 %v3342_v49, %v3347_v1  ;;  %v1614_v12 = vadd.f32 %v3344_v38, %v1613_v36  ;;  %v1631_v61 = vmul.f32 %v2487_v43, %v3262_v55 }
 0x1f5   : > { %v3353_v31 = vpop.f32.mrf.mxu1  ;;  %v1608_v39 = vrot.slane %v1607_v54, 2  ;;  %v1640_v48 = vsub.f32 2.0, %v1632_v11 }
 0x1f6   : > { %1688 = vmatpush1.xpose.msra.mxu1 %v1082_v0  ;;  %v1615_v25 = vrot.slane %v1614_v12, 4  ;;  %1121 = vmax.xlane.f32.xlu1 %v1120_v13  ;;  %v1639_v41 = vsub.f32 2.0, %v1631_v61  ;;  %v1592_v13 = vrot.slane %v1591_v63, 1 }
 0x1f7   : > { %1689 = vmatprep.subr.mxu1 %v1078_v2  ;;  %v3356_v26 = vpop.f32.mrf.mxu1  ;;  %v1609_v1 = vadd.f32 %v1608_v39, %v1607_v54  ;;  %v1648_v36 = vmul.f32 %v2485_v57, %v1640_v48 }
 0x1f8   : > { %v1123_v20 = vmax.f32 %v3353_v31, %v3356_v26  ;;  %v1616_v49 = vadd.f32 %v1615_v25, %v1614_v12  ;;  %v1647_v55 = vmul.f32 %v2487_v43, %v1639_v41 }
 0x1f9   : > { %v3360_v45 = vpop.f32.mrf.mxu1  ;;  %v1610_v11 = vrot.slane %v1609_v1, 1  ;;  %v3364_v27 = vmul.f32 %v3185_v56, %v1648_v36  ;;  %v3367_v2 = vmul.f32 %v3176_v62, %v1648_v36  ;;  %v3370_v39 = vmul.f32 %v3163_v37, %v1648_v36 }
 0x1fa   : > { %1690 = vmatpush1.xpose.msra.mxu1 %v3277_v33  ;;  %1124 = vmax.xlane.f32.xlu1 %v1123_v20  ;;  %v1617_v0 = vrot.slane %v1616_v49, 2  ;;  %v3376_v57 = vmul.f32 %v3151_v4, %v1647_v55  ;;  %v3379_v33 = vmul.f32 %v3140_v51, %v1647_v55  ;;  %v3384_v37 = vmul.f32 %v3137_v46, %v1647_v55 }
 0x1fb   : > { %1691 = vmatprep.subr.mxu1 %v3265_v59  ;;  %v3373_v25 = vpop.f32.mrf.mxu1  ;;  %v1611_v56 = vadd.f32 %v1610_v11, %v1609_v1  ;;  %v3387_v59 = vmul.f32 %v3153_v17, %v1648_v36  ;;  %v3392_v28 = vmul.f32 %v3129_v9, %v1647_v55  ;;  %v1602_v51 = vadd.f32 %v1601_v58, %v1600_v6 }
 0x1fc   : > { %v1126_v62 = vmax.f32 %v3360_v45, %v3373_v25  ;;  %v1618_v16 = vadd.f32 %v1617_v0, %v1616_v49  ;;  %v1593_v1 = vadd.f32 %v1592_v13, %v1591_v63 }
 0x1fd   : > { %v3389_v54 = vpop.f32.mrf.mxu1  ;;  %2488 = vrcp.f32 %v1611_v56 }
 0x1fe   : > { %1692 = vmatpush1.xpose.msra.mxu1 %v3254_v18  ;;  %1127 = vmax.xlane.f32.xlu1 %v1126_v62  ;;  %v1619_v46 = vrot.slane %v1618_v16, 1  ;;  %2490 = vrcp.f32 %v1602_v51 }
 0x1ff   : > { %1693 = vmatprep.subr.mxu1 %v3244_v19  ;;  %v3396_v4 = vpop.f32.mrf.mxu1 }
 0x200   : > { %v1129_v17 = vmax.f32 %v3389_v54, %v3396_v4  ;;  %v1620_v49 = vadd.f32 %v1619_v46, %v1618_v16 }
 0x201   : > { %v3400_v43 = vpop.f32.mrf.mxu1 }
 0x202   : > { %1694 = vmatpush1.xpose.msra.mxu1 %v3230_v21  ;;  %1130 = vmax.xlane.f32.xlu1 %v1129_v17  ;;  %2492 = vrcp.f32 %v1620_v49 }
 0x203   : > { %1695 = vmatprep.subr.mxu1 %v3222_v15  ;;  %v3404_v9 = vpop.f32.mrf.mxu1  ;;  %2494 = vrcp.f32 %v1593_v1 }
 0x204   : > { %v1132_v6 = vmax.f32 %v3400_v43, %v3404_v9 }
 0x205   : > { %v3408_v19 = vpop.f32.mrf.mxu1 }
 0x206   : > { %1696 = vmatpush1.xpose.msra.mxu1 %v3216_v35  ;;  %1133 = vmax.xlane.f32.xlu1 %v1132_v6 }
 0x207   : > { %1697 = vmatprep.subr.mxu1 %v3204_v14  ;;  %v3412_v18 = vpop.f32.mrf.mxu1 }
 0x208   : > { %v1135_v21 = vmax.f32 %v3408_v19, %v3412_v18 }
 0x209   : > { %v3416_v15 = vpop.f32.mrf.mxu1 }
 0x20a   : > { %1698 = vmatpush1.xpose.msra.mxu1 %v3199_v42  ;;  %v2489_v12 = vpop.eup %2488  ;;  %1136 = vmax.xlane.f32.xlu1 %v1135_v21  ;;  %v3821_v21 = vld [vmem:[#allocation17_spill] sm:$0xff] }
 0x20b   : > { %1699 = vmatprep.subr.mxu1 %v3190_v50  ;;  %v3420_v61 = vpop.f32.mrf.mxu1  ;;  %v1635_v14 = vmul.f32 %v2489_v12, %v1611_v56  ;;  %v2491_v48 = vpop.eup %2490  ;;  %v3813_v56 = vld [vmem:[#allocation20_spill] sm:$0xff] }
 0x20c   : > { %v1138_v35 = vmax.f32 %v3416_v15, %v3420_v61  ;;  %v1634_v36 = vmul.f32 %v2491_v48, %v1602_v51 }
 0x20d   : > { %v1643_v41 = vsub.f32 2.0, %v1635_v14  ;;  %v3824_v14 = vld [vmem:[#allocation14_spill] sm:$0xff] }
 0x20e   : > { %1700 = vmatpush1.xpose.msra.mxu1 %v3183_v30  ;;  %1139 = vmax.xlane.f32.xlu1 %v1138_v35  ;;  %v1642_v30 = vsub.f32 2.0, %v1634_v36  ;;  %v3823_v35 = vld [vmem:[#allocation15_spill] sm:$0xff] }
 0x20f   : > { %1701 = vmatprep.subr.mxu1 %v3174_v52  ;;  %v2493_v63 = vpop.eup %2492  ;;  %v1651_v58 = vmul.f32 %v2489_v12, %v1643_v41  ;;  %v3822_v12 = vld [vmem:[#allocation16_spill] sm:$0xff]  ;;  %v3832_v41 = vld [vmem:[#allocation51_spill] sm:$0xff] }
 0x210   : > { %v2495_v20 = vpop.eup %2494  ;;  %v1636_v42 = vmul.f32 %v2493_v63, %v1620_v49  ;;  %v3820_v49 = vld [vmem:[#allocation27_spill] sm:$0xff] }
 0x211   : > { %v1633_v55 = vmul.f32 %v2495_v20, %v1593_v1  ;;  %v1683_v0 = vmul.f32 %v3326_v53, %v1651_v58  ;;  %v3819_v1 = vld [vmem:[#allocation18_spill] sm:$0xff] }
 0x212   : > { %1702 = vmatpush1.xpose.msra.mxu1 %v3161_v34  ;;  %v1644_v50 = vsub.f32 2.0, %v1636_v42 }
 0x213   : > { %1703 = vmatprep.subr.mxu1 %v3149_v3  ;;  %v1641_v13 = vsub.f32 2.0, %v1633_v55  ;;  %v1681_v3 = vmul.f32 %v3322_v5, %v1651_v58  ;;  %v3811_v5 = vld [vmem:[#allocation39_spill] sm:$0xff] }
 0x214   : > { %v1652_v11 = vmul.f32 %v2493_v63, %v1644_v50  ;;  %v3828_v63 = vld [vmem:[#allocation44_spill] sm:$0xff]  ;;  %v3835_v55 = vld [vmem:[#allocation23_spill] sm:$0xff] }
 0x215   : > { %v1649_v62 = vmul.f32 %v2495_v20, %v1641_v13 }
 0x216   : > { %1704 = vmatpush1.xpose.msra.mxu1 %v3135_v40  ;;  %v1684_v52 = vmul.f32 %v3344_v38, %v1652_v11  ;;  %v1682_v34 = vmul.f32 %v3338_v7, %v1652_v11  ;;  %v1680_v40 = vmul.f32 %v3333_v22, %v1652_v11  ;;  %v1679_v38 = vmul.f32 %v3308_v32, %v1651_v58  ;;  %v3812_v7 = vld [vmem:[#allocation36_spill] sm:$0xff] }
 0x217   : > { %1705 = vmatprep.subr.mxu1 %v3120_v29  ;;  %v1650_v29 = vmul.f32 %v2491_v48, %v1642_v30  ;;  %v1678_v53 = vmul.f32 %v3329_v24, %v1652_v11  ;;  %v1675_v22 = vmul.f32 %v3811_v5, %v1649_v62  ;;  %v3814_v24 = vld [vmem:[#allocation31_spill] sm:$0xff]  ;;  %v1669_v6 = vmul.f32 %v3820_v49, %v1649_v62 }
 0x218   : > { %1894 = vmatprep.subr.mxu0 %v1684_v52  ;;  %v1673_v16 = vmul.f32 %v3814_v24, %v1649_v62  ;;  %v3826_v48 = vld [vmem:[#allocation43_spill] sm:$0xff]  ;;  %v3836_v52 = vld [vmem:[#allocation24_spill] sm:$0xff] }
 0x219   : > { %1895 = vmatpush1.msra.mxu0 %v1683_v0  ;;  %v1674_v32 = vmul.f32 %v3812_v7, %v1650_v29 }
 0x21a   : > { %1706 = vmatpush1.xpose.msra.mxu1 %v3112_v23  ;;  %1896 = vmatprep.subr.mxu0 %v1682_v34  ;;  %v1677_v23 = vmul.f32 %v3297_v8, %v1651_v58  ;;  %v3816_v8 = vld [vmem:[#allocation34_spill] sm:$0xff] }
 0x21b   : > { %1707 = vmatprep.subr.mxu1 %v3108_v10  ;;  %1897 = vmatpush1.msra.mxu0 %v1681_v3  ;;  %v1676_v10 = vmul.f32 %v3267_v44, %v1650_v29  ;;  %v1672_v51 = vmul.f32 %v3816_v8, %v1650_v29  ;;  %v3818_v44 = vld [vmem:[#allocation33_spill] sm:$0xff] }
 0x21c   : > { %1898 = vmatprep.subr.mxu0 %v1680_v40  ;;  %v1670_v17 = vmul.f32 %v3818_v44, %v1650_v29  ;;  %v3837_v3 = vld [vmem:[#allocation25_spill] sm:$0xff]  ;;  %v3838_v29 = vld [vmem:[#allocation26_spill] sm:$0xff] }
 0x21d   : > { %1899 = vmatpush1.msra.mxu0 %v1679_v38 }
 0x21e   : > { %1708 = vmatpush1.xpose.msra.mxu1 %v3101_v60  ;;  %1900 = vmatprep.subr.mxu0 %v1678_v53  ;;  %v3815_v60 = vld [vmem:[#allocation19_spill] sm:$0xff] }
 0x21f   : > { %1709 = vmatprep.subr.mxu1 %v3094_v47  ;;  %1901 = vmatpush1.msra.mxu0 %v1677_v23  ;;  %v3817_v47 = vld [vmem:[#allocation29_spill] sm:$0xff] }
 0x220   : > { %1902 = vmatprep.subr.mxu0 %v1676_v10  ;;  %v1671_v46 = vmul.f32 %v3817_v47, %v1649_v62  ;;  %v3839_v10 = vld [vmem:[#allocation28_spill] sm:$0xff] }
 0x221   : > { %1903 = vmatpush1.msra.mxu0 %v1675_v22  ;;  %v3840_v22 = vld [vmem:[#allocation30_spill] sm:$0xff] }
 0x222   : > { %1710 = vmatpush1.xpose.msra.mxu1 %v3813_v56  ;;  %1904 = vmatprep.subr.mxu0 %v1674_v32 }
 0x223   : > { %1711 = vmatprep.subr.mxu1 %v3815_v60  ;;  %1905 = vmatpush1.msra.mxu0 %v1673_v16  ;;  %v3841_v60 = vld [vmem:[#allocation32_spill] sm:$0xff] }
 0x224   : > { %1906 = vmatprep.subr.mxu0 %v1672_v51  ;;  %v3842_v51 = vld [vmem:[#allocation35_spill] sm:$0xff] }
 0x225   : > { %1907 = vmatpush1.msra.mxu0 %v1671_v46 }
 0x226   : > { %1712 = vmatpush1.xpose.msra.mxu1 %v3819_v1  ;;  %1908 = vmatprep.subr.mxu0 %v1670_v17 }
 0x227   : > { %1713 = vmatprep.subr.mxu1 %v3821_v21  ;;  %1909 = vmatpush1.msra.mxu0 %v1669_v6  ;;  %v3843_v21 = vld [vmem:[#allocation37_spill] sm:$0xff] }
 0x228   : > { %1910 = vmatprep.subr.mxu0 %v3364_v27  ;;  %v3825_v27 = vld [vmem:[#allocation46_spill] sm:$0xff] }
 0x229   : > { %1911 = vmatpush1.msra.mxu0 %v3376_v57  ;;  %v3827_v57 = vld [vmem:[#allocation47_spill] sm:$0xff] }
 0x22a   : > { %1714 = vmatpush1.xpose.msra.mxu1 %v3822_v12  ;;  %1912 = vmatprep.subr.mxu0 %v3367_v2  ;;  %v3829_v2 = vld [vmem:[#allocation48_spill] sm:$0xff] }
 0x22b   : > { %1715 = vmatprep.subr.mxu1 %v3823_v35  ;;  %1913 = vmatpush1.msra.mxu0 %v3379_v33  ;;  %v3830_v33 = vld [vmem:[#allocation45_spill] sm:$0xff]  ;;  %v3844_v35 = vld [vmem:[#allocation38_spill] sm:$0xff] }
 0x22c   : > { %1914 = vmatprep.subr.mxu0 %v3370_v39  ;;  %v3831_v39 = vld [vmem:[#allocation50_spill] sm:$0xff] }
 0x22d   : > { %1915 = vmatpush1.msra.mxu0 %v3384_v37 }
 0x22e   : > { %1716 = vmatpush1.xpose.msra.mxu1 %v3824_v14  ;;  %1916 = vmatprep.subr.mxu0 %v3387_v59  ;;  %v3833_v59 = vld [vmem:[#allocation21_spill] sm:$0xff] }
 0x22f   : > { %1917 = vmatpush1.msra.mxu0 %v3392_v28  ;;  %v3834_v28 = vld [vmem:[#allocation22_spill] sm:$0xff] }
 0x230   : > { %1918 = vmatprep.subr.mxu0 %v3825_v27 }
 0x231   : > { %1919 = vmatpush1.msra.mxu0 %v3826_v48 }
 0x232   : > { %1920 = vmatprep.subr.mxu0 %v3827_v57 }
 0x233   : > { %1921 = vmatpush1.msra.mxu0 %v3828_v63 }
 0x234   : > { %1922 = vmatprep.subr.mxu0 %v3829_v2 }
 0x235   : > { %1923 = vmatpush1.msra.mxu0 %v3830_v33 }
 0x236   : > { %1924 = vmatprep.subr.mxu0 %v3831_v39  ;;  %v3845_v39 = vld [vmem:[#allocation40_spill] sm:$0xff] }
 0x237   : > { %1925 = vmatpush1.msra.mxu0 %v3832_v41 }
 0x25b   : > { %v1095_v37 = vpop.xlane.xlu1 %1094 }
 0x25c   : > { %v1141_v20 = vsub.f32 %v3833_v59, %v1095_v37  ;;  %v1142_v42 = vsub.f32 %v3834_v28, %v1095_v37  ;;  %v3846_v37 = vld [vmem:[#allocation41_spill] sm:$0xff] }
 0x25e   : > { %v1173_v50 = vmul.f32 1.442695, %v1141_v20  ;;  %v1175_v36 = vmul.f32 1.442695, %v1142_v42 }
 0x25f   : > { %v1098_v58 = vpop.xlane.xlu0 %1097 }
 0x260   : > { %2496 = vpow2.f32 %v1173_v50  ;;  %v1143_v11 = vsub.f32 %v3835_v55, %v1098_v58  ;;  %v1144_v30 = vsub.f32 %v3836_v52, %v1098_v58  ;;  %v3847_v55 = vld [vmem:[#allocation42_spill] sm:$0xff]  ;;  %v3848_v52 = vld [vmem:[#allocation49_spill] sm:$0xff] }
 0x261   : > { %2498 = vpow2.f32 %v1175_v36 }
 0x262   : > { %v1177_v0 = vmul.f32 1.442695, %v1143_v11  ;;  %v1179_v13 = vmul.f32 1.442695, %v1144_v30 }
 0x263   : > { %v1101_v34 = vpop.xlane.xlu1 %1100 }
 0x264   : > { %2500 = vpow2.f32 %v1177_v0  ;;  %v1145_v40 = vsub.f32 %v3837_v3, %v1101_v34  ;;  %v1146_v38 = vsub.f32 %v3838_v29, %v1101_v34  ;;  %v3849_v29 = vld [vmem:[#allocation52_spill] sm:$0xff] }
 0x265   : > { %2502 = vpow2.f32 %v1179_v13 }
 0x266   : > { %v1181_v62 = vmul.f32 1.442695, %v1145_v40  ;;  %v1183_v53 = vmul.f32 1.442695, %v1146_v38 }
 0x267   : > { %v1104_v23 = vpop.xlane.xlu1 %1103 }
 0x268   : > { %2504 = vpow2.f32 %v1181_v62  ;;  %v1147_v5 = vsub.f32 %v3839_v10, %v1104_v23  ;;  %v1148_v7 = vsub.f32 %v3840_v22, %v1104_v23  ;;  %v3850_v62 = vld [vmem:[#allocation53_spill] sm:$0xff] }
 0x269   : > { %2506 = vpow2.f32 %v1183_v53 }
 0x26a   : > { %v1185_v32 = vmul.f32 1.442695, %v1147_v5  ;;  %v1187_v56 = vmul.f32 1.442695, %v1148_v7 }
 0x26b   : > { %v1107_v24 = vpop.xlane.xlu1 %1106 }
 0x26c   : > { %2508 = vpow2.f32 %v1185_v32  ;;  %v1149_v8 = vsub.f32 %v3841_v60, %v1107_v24  ;;  %v1150_v47 = vsub.f32 %v3842_v51, %v1107_v24  ;;  %v3852_v60 = vld [vmem:[#allocation55_spill] sm:$0xff] }
 0x26d   : > { %v3481_v16 = vpop.eup %2496  ;;  %2510 = vpow2.f32 %v1187_v56  ;;  %v3851_v56 = vld [vmem:[#allocation54_spill] sm:$0xff] }
 0x26e   : > { %v3485_v46 = vpop.eup %2498  ;;  %v1189_v44 = vmul.f32 1.442695, %v1149_v8  ;;  %v1191_v17 = vmul.f32 1.442695, %v1150_v47 }
 0x26f   : > { %v1237_v1 = vadd.f32 %v3485_v46, %v3481_v16  ;;  %v1110_v49 = vpop.xlane.xlu1 %1109 }
 0x270   : > { %2512 = vpow2.f32 %v1189_v44  ;;  %v1151_v12 = vsub.f32 %v3843_v21, %v1110_v49  ;;  %v1152_v14 = vsub.f32 %v3844_v35, %v1110_v49 }
 0x271   : > { %v3489_v6 = vpop.eup %2500  ;;  %1238 = vadd.xlane.f32.xlu1 %v1237_v1  ;;  %2514 = vpow2.f32 %v1191_v17 }
 0x272   : > { %v3493_v27 = vpop.eup %2502  ;;  %v1193_v48 = vmul.f32 1.442695, %v1151_v12  ;;  %v1195_v57 = vmul.f32 1.442695, %v1152_v14 }
 0x273   : > { %v1240_v63 = vadd.f32 %v3493_v27, %v3489_v6  ;;  %v1113_v2 = vpop.xlane.xlu1 %1112 }
 0x274   : > { %2516 = vpow2.f32 %v1193_v48  ;;  %v1153_v41 = vsub.f32 %v3845_v39, %v1113_v2  ;;  %v1154_v59 = vsub.f32 %v3846_v37, %v1113_v2 }
 0x275   : > { %v3497_v33 = vpop.eup %2504  ;;  %1241 = vadd.xlane.f32.xlu1 %v1240_v63  ;;  %2518 = vpow2.f32 %v1195_v57 }
 0x276   : > { %v3501_v20 = vpop.eup %2506  ;;  %v1197_v28 = vmul.f32 1.442695, %v1153_v41  ;;  %v1199_v42 = vmul.f32 1.442695, %v1154_v59 }
 0x277   : > { %v1243_v50 = vadd.f32 %v3501_v20, %v3497_v33  ;;  %v1116_v36 = vpop.xlane.xlu1 %1115 }
 0x278   : > { %2520 = vpow2.f32 %v1197_v28  ;;  %v1155_v11 = vsub.f32 %v3847_v55, %v1116_v36  ;;  %v1156_v30 = vsub.f32 %v3848_v52, %v1116_v36 }
 0x279   : > { %v3505_v58 = vpop.eup %2508  ;;  %1244 = vadd.xlane.f32.xlu1 %v1243_v50  ;;  %2522 = vpow2.f32 %v1199_v42 }
 0x27a   : > { %v3509_v0 = vpop.eup %2510  ;;  %v1201_v13 = vmul.f32 1.442695, %v1155_v11  ;;  %v1203_v34 = vmul.f32 1.442695, %v1156_v30 }
 0x27b   : > { %v1246_v3 = vadd.f32 %v3509_v0, %v3505_v58  ;;  %v1119_v40 = vpop.xlane.xlu1 %1118 }
 0x27c   : > { %2524 = vpow2.f32 %v1201_v13  ;;  %v1157_v38 = vsub.f32 %v3849_v29, %v1119_v40  ;;  %v1158_v53 = vsub.f32 %v3850_v62, %v1119_v40 }
 0x27d   : > { %1247 = vadd.xlane.f32.xlu0 %v1246_v3  ;;  %v3515_v23 = vpop.eup %2512  ;;  %2526 = vpow2.f32 %v1203_v34 }
 0x27e   : > { %v3517_v10 = vpop.eup %2514  ;;  %v1205_v5 = vmul.f32 1.442695, %v1157_v38  ;;  %v1207_v22 = vmul.f32 1.442695, %v1158_v53 }
 0x27f   : > { %v1122_v7 = vpop.xlane.xlu1 %1121  ;;  %v1249_v32 = vadd.f32 %v3517_v10, %v3515_v23 }
 0x280   : > { %2528 = vpow2.f32 %v1205_v5  ;;  %v1159_v24 = vsub.f32 %v3851_v56, %v1122_v7  ;;  %v1160_v8 = vsub.f32 %v3852_v60, %v1122_v7 }
 0x281   : > { %v3523_v51 = vpop.eup %2516  ;;  %2530 = vpow2.f32 %v1207_v22  ;;  %1250 = vadd.xlane.f32.xlu1 %v1249_v32 }
 0x282   : > { %v3525_v47 = vpop.eup %2518  ;;  %v1209_v44 = vmul.f32 1.442695, %v1159_v24  ;;  %v1211_v17 = vmul.f32 1.442695, %v1160_v8 }
 0x283   : > { %v1125_v1 = vpop.xlane.xlu1 %1124  ;;  %v1252_v49 = vadd.f32 %v3525_v47, %v3523_v51 }
 0x284   : > { %2532 = vpow2.f32 %v1209_v44  ;;  %v1161_v21 = vsub.f32 %v3353_v31, %v1125_v1  ;;  %v1162_v12 = vsub.f32 %v3356_v26, %v1125_v1 }
 0x285   : > { %v3531_v35 = vpop.eup %2520  ;;  %2534 = vpow2.f32 %v1211_v17  ;;  %1253 = vadd.xlane.f32.xlu0 %v1252_v49 }
 0x286   : > { %v3533_v14 = vpop.eup %2522  ;;  %v1213_v48 = vmul.f32 1.442695, %v1161_v21  ;;  %v1215_v57 = vmul.f32 1.442695, %v1162_v12 }
 0x287   : > { %v1128_v63 = vpop.xlane.xlu1 %1127  ;;  %v1255_v2 = vadd.f32 %v3533_v14, %v3531_v35 }
 0x288   : > { %2536 = vpow2.f32 %v1213_v48  ;;  %v1163_v39 = vsub.f32 %v3360_v45, %v1128_v63  ;;  %v1164_v41 = vsub.f32 %v3373_v25, %v1128_v63 }
 0x289   : > { %v3539_v31 = vpop.eup %2524  ;;  %2538 = vpow2.f32 %v1215_v57  ;;  %1256 = vadd.xlane.f32.xlu1 %v1255_v2 }
 0x28a   : > { %v3541_v26 = vpop.eup %2526  ;;  %v1217_v37 = vmul.f32 1.442695, %v1163_v39  ;;  %v1219_v59 = vmul.f32 1.442695, %v1164_v41 }
 0x28b   : > { %v1131_v28 = vpop.xlane.xlu1 %1130  ;;  %v1258_v42 = vadd.f32 %v3541_v26, %v3539_v31 }
 0x28c   : > { %2540 = vpow2.f32 %v1217_v37  ;;  %v1165_v50 = vsub.f32 %v3389_v54, %v1131_v28  ;;  %v1166_v36 = vsub.f32 %v3396_v4, %v1131_v28 }
 0x28d   : > { %v3547_v45 = vpop.eup %2528  ;;  %2542 = vpow2.f32 %v1219_v59  ;;  %1259 = vadd.xlane.f32.xlu0 %v1258_v42 }
 0x28e   : > { %v3549_v25 = vpop.eup %2530  ;;  %v1221_v55 = vmul.f32 1.442695, %v1165_v50  ;;  %v1223_v11 = vmul.f32 1.442695, %v1166_v36 }
 0x28f   : > { %v1134_v52 = vpop.xlane.xlu1 %1133  ;;  %v1261_v30 = vadd.f32 %v3549_v25, %v3547_v45 }
 0x290   : > { %2544 = vpow2.f32 %v1221_v55  ;;  %v1167_v13 = vsub.f32 %v3400_v43, %v1134_v52  ;;  %v1168_v34 = vsub.f32 %v3404_v9, %v1134_v52 }
 0x291   : > { %v3555_v54 = vpop.eup %2532  ;;  %2546 = vpow2.f32 %v1223_v11  ;;  %1262 = vadd.xlane.f32.xlu1 %v1261_v30 }
 0x292   : > { %v3557_v4 = vpop.eup %2534  ;;  %v1225_v3 = vmul.f32 1.442695, %v1167_v13  ;;  %v1227_v40 = vmul.f32 1.442695, %v1168_v34 }
 0x293   : > { %v1137_v29 = vpop.xlane.xlu1 %1136  ;;  %v1264_v38 = vadd.f32 %v3557_v4, %v3555_v54 }
 0x294   : > { %2548 = vpow2.f32 %v1225_v3  ;;  %v1169_v62 = vsub.f32 %v3408_v19, %v1137_v29  ;;  %v1170_v53 = vsub.f32 %v3412_v18, %v1137_v29 }
 0x295   : > { %v3563_v43 = vpop.eup %2536  ;;  %2550 = vpow2.f32 %v1227_v40  ;;  %1265 = vadd.xlane.f32.xlu0 %v1264_v38 }
 0x296   : > { %v3565_v9 = vpop.eup %2538  ;;  %v1229_v5 = vmul.f32 1.442695, %v1169_v62  ;;  %v1231_v22 = vmul.f32 1.442695, %v1170_v53 }
 0x297   : > { %v1140_v7 = vpop.xlane.xlu1 %1139  ;;  %v1267_v32 = vadd.f32 %v3565_v9, %v3563_v43 }
 0x298   : > { %2552 = vpow2.f32 %v1229_v5  ;;  %v1171_v56 = vsub.f32 %v3416_v15, %v1140_v7  ;;  %v1172_v24 = vsub.f32 %v3420_v61, %v1140_v7 }
 0x299   : > { %v3571_v19 = vpop.eup %2540  ;;  %2554 = vpow2.f32 %v1231_v22  ;;  %1268 = vadd.xlane.f32.xlu1 %v1267_v32 }
 0x29a   : > { %v3573_v18 = vpop.eup %2542  ;;  %v1233_v60 = vmul.f32 1.442695, %v1171_v56  ;;  %v1235_v8 = vmul.f32 1.442695, %v1172_v24 }
 0x29b   : > { %v1270_v44 = vadd.f32 %v3573_v18, %v3571_v19 }
 0x29c   : > { %2556 = vpow2.f32 %v1233_v60 }
 0x29d   : > { %v3577_v17 = vpop.eup %2544  ;;  %2558 = vpow2.f32 %v1235_v8  ;;  %1271 = vadd.xlane.f32.xlu0 %v1270_v44 }
 0x29e   : > { %v3579_v1 = vpop.eup %2546 }
 0x29f   : > { %v1273_v15 = vadd.f32 %v3579_v1, %v3577_v17 }
 0x2a1   : > { %v3583_v61 = vpop.eup %2548  ;;  %1274 = vadd.xlane.f32.xlu1 %v1273_v15 }
 0x2a2   : > { %v3585_v49 = vpop.eup %2550 }
 0x2a3   : > { %v1276_v21 = vadd.f32 %v3585_v49, %v3583_v61 }
 0x2a5   : > { %v3589_v12 = vpop.eup %2552  ;;  %1277 = vadd.xlane.f32.xlu0 %v1276_v21 }
 0x2a6   : > { %v3591_v48 = vpop.eup %2554 }
 0x2a7   : > { %v1279_v57 = vadd.f32 %v3591_v48, %v3589_v12 }
 0x2a9   : > { %v3595_v63 = vpop.eup %2556  ;;  %1280 = vadd.xlane.f32.xlu1 %v1279_v57 }
 0x2aa   : > { %v3597_v2 = vpop.eup %2558 }
 0x2ab   : > { %v1282_v39 = vadd.f32 %v3597_v2, %v3595_v63 }
 0x2ad   : > { %1283 = vadd.xlane.f32.xlu0 %v1282_v39 }
 0x2fa   : > { %v1239_v41 = vpop.xlane.xlu1 %1238 }
 0x2fb   : > { %2560 = vrcp.f32 %v1239_v41 }
 0x2fe   : > { %v1242_v37 = vpop.xlane.xlu1 %1241 }
 0x2ff   : > { %2562 = vrcp.f32 %v1242_v37 }
 0x302   : > { %v1245_v59 = vpop.xlane.xlu1 %1244 }
 0x303   : > { %2564 = vrcp.f32 %v1245_v59 }
 0x306   : > { %v1248_v28 = vpop.xlane.xlu0 %1247 }
 0x307   : > { %2566 = vrcp.f32 %v1248_v28 }
 0x308   : > { %v2561_v42 = vpop.eup %2560 }
 0x309   : > { %v1301_v50 = vmul.f32 %v2561_v42, %v1239_v41 }
 0x30a   : > { %v1251_v55 = vpop.xlane.xlu1 %1250 }
 0x30b   : > { %v1317_v36 = vsub.f32 2.0, %v1301_v50  ;;  %2568 = vrcp.f32 %v1251_v55 }
 0x30c   : > { %v2563_v11 = vpop.eup %2562 }
 0x30d   : > { %v1333_v52 = vmul.f32 %v2561_v42, %v1317_v36  ;;  %v1302_v30 = vmul.f32 %v2563_v11, %v1242_v37 }
 0x30e   : > { %v1254_v3 = vpop.xlane.xlu0 %1253 }
 0x30f   : > { %v1349_v13 = vmul.f32 %v3481_v16, %v1333_v52  ;;  %v1318_v34 = vsub.f32 2.0, %v1302_v30  ;;  %v1350_v40 = vmul.f32 %v3485_v46, %v1333_v52  ;;  %2570 = vrcp.f32 %v1254_v3 }
 0x310   : > { %v2565_v29 = vpop.eup %2564 }
 0x311   : > { %v1334_v38 = vmul.f32 %v2563_v11, %v1318_v34  ;;  %v1303_v62 = vmul.f32 %v2565_v29, %v1245_v59  ;;  %1749 = vmatprep.mubr.f32.mxu1 %v1350_v40 }
 0x312   : > { %1750 = vmatmul.mubr.f32.vlgmr.msra.gmra.mxu1 %v1349_v13  ;;  %v1257_v5 = vpop.xlane.xlu1 %1256 }
 0x313   : > { %v1319_v53 = vsub.f32 2.0, %v1303_v62  ;;  %v1352_v22 = vmul.f32 %v3493_v27, %v1334_v38  ;;  %v1351_v7 = vmul.f32 %v3489_v6, %v1334_v38  ;;  %2572 = vrcp.f32 %v1257_v5 }
 0x314   : > { %v2567_v32 = vpop.eup %2566 }
 0x315   : > { %v1335_v56 = vmul.f32 %v2565_v29, %v1319_v53  ;;  %v1304_v16 = vmul.f32 %v2567_v32, %v1248_v28  ;;  %1754 = vmatprep.mubr.f32.mxu1 %v1352_v22 }
 0x316   : > { %1755 = vmatmul.mubr.f32.gmra.mxu1 %v1351_v7  ;;  %v1260_v46 = vpop.xlane.xlu0 %1259 }
 0x317   : > { %v1320_v24 = vsub.f32 2.0, %v1304_v16  ;;  %v1354_v60 = vmul.f32 %v3501_v20, %v1335_v56  ;;  %v1353_v8 = vmul.f32 %v3497_v33, %v1335_v56  ;;  %2574 = vrcp.f32 %v1260_v46 }
 0x318   : > { %v2569_v44 = vpop.eup %2568 }
 0x319   : > { %v1336_v15 = vmul.f32 %v2567_v32, %v1320_v24  ;;  %1759 = vmatprep.mubr.f32.mxu1 %v1354_v60  ;;  %v1305_v21 = vmul.f32 %v2569_v44, %v1251_v55 }
 0x31a   : > { %1760 = vmatmul.mubr.f32.gmra.mxu1 %v1353_v8  ;;  %v1263_v27 = vpop.xlane.xlu1 %1262 }
 0x31b   : > { %v1356_v6 = vmul.f32 %v3509_v0, %v1336_v15  ;;  %v1355_v57 = vmul.f32 %v3505_v58, %v1336_v15  ;;  %v1321_v39 = vsub.f32 2.0, %v1305_v21  ;;  %2576 = vrcp.f32 %v1263_v27 }
 0x31c   : > { %v2571_v41 = vpop.eup %2570 }
 0x31d   : > { %1764 = vmatprep.mubr.f32.mxu1 %v1356_v6  ;;  %v1337_v37 = vmul.f32 %v2569_v44, %v1321_v39  ;;  %v1306_v59 = vmul.f32 %v2571_v41, %v1254_v3 }
 0x31e   : > { %1765 = vmatmul.mubr.f32.gmra.mxu1 %v1355_v57  ;;  %v1266_v20 = vpop.xlane.xlu0 %1265 }
 0x31f   : > { %v1322_v33 = vsub.f32 2.0, %v1306_v59  ;;  %2578 = vrcp.f32 %v1266_v20  ;;  %v1358_v28 = vmul.f32 %v3517_v10, %v1337_v37  ;;  %v1357_v42 = vmul.f32 %v3515_v23, %v1337_v37 }
 0x320   : > { %v2573_v50 = vpop.eup %2572 }
 0x321   : > { %v1338_v36 = vmul.f32 %v2571_v41, %v1322_v33  ;;  %v1307_v55 = vmul.f32 %v2573_v50, %v1257_v5  ;;  %1769 = vmatprep.mubr.f32.mxu1 %v1358_v28 }
 0x322   : > { %v1269_v0 = vpop.xlane.xlu1 %1268  ;;  %1770 = vmatmul.mubr.f32.gmra.mxu1 %v1357_v42 }
 0x323   : > { %v1323_v58 = vsub.f32 2.0, %v1307_v55  ;;  %2580 = vrcp.f32 %v1269_v0  ;;  %v1360_v11 = vmul.f32 %v3525_v47, %v1338_v36  ;;  %v1359_v52 = vmul.f32 %v3523_v51, %v1338_v36 }
 0x324   : > { %v2575_v30 = vpop.eup %2574 }
 0x325   : > { %v1339_v13 = vmul.f32 %v2573_v50, %v1323_v58  ;;  %v1308_v34 = vmul.f32 %v2575_v30, %v1260_v46  ;;  %1774 = vmatprep.mubr.f32.mxu1 %v1360_v11 }
 0x326   : > { %v1272_v3 = vpop.xlane.xlu0 %1271  ;;  %1775 = vmatmul.mubr.f32.gmra.mxu1 %v1359_v52 }
 0x327   : > { %v1324_v10 = vsub.f32 2.0, %v1308_v34  ;;  %2582 = vrcp.f32 %v1272_v3  ;;  %v1362_v23 = vmul.f32 %v3533_v14, %v1339_v13  ;;  %v1361_v40 = vmul.f32 %v3531_v35, %v1339_v13 }
 0x328   : > { %v2577_v29 = vpop.eup %2576 }
 0x329   : > { %v1340_v38 = vmul.f32 %v2575_v30, %v1324_v10  ;;  %v1309_v62 = vmul.f32 %v2577_v29, %v1263_v27  ;;  %1779 = vmatprep.mubr.f32.mxu1 %v1362_v23 }
 0x32a   : > { %v1275_v53 = vpop.xlane.xlu1 %1274  ;;  %1780 = vmatmul.mubr.f32.gmra.mxu1 %v1361_v40 }
 0x32b   : > { %v1325_v47 = vsub.f32 2.0, %v1309_v62  ;;  %2584 = vrcp.f32 %v1275_v53  ;;  %v1364_v51 = vmul.f32 %v3541_v26, %v1340_v38  ;;  %v1363_v5 = vmul.f32 %v3539_v31, %v1340_v38  ;;  %v1832_v62 = vld [vmem:[#allocation5 + $0x10] sm:$0xff] }
 0x32c   : > { %v2579_v22 = vpop.eup %2578 }
 0x32d   : > { %v1341_v7 = vmul.f32 %v2577_v29, %v1325_v47  ;;  %v1310_v32 = vmul.f32 %v2579_v22, %v1266_v20  ;;  %1784 = vmatprep.mubr.f32.mxu1 %v1364_v51  ;;  %v1831_v29 = vld [vmem:[#allocation5 + $0x8] sm:$0xff]  ;;  %v1833_v51 = vld [vmem:[#allocation5 + $0x18] sm:$0xff] }
 0x32e   : > { %v1278_v56 = vpop.xlane.xlu0 %1277  ;;  %1785 = vmatmul.mubr.f32.gmra.mxu1 %v1363_v5 }
 0x32f   : > { %v1326_v14 = vsub.f32 2.0, %v1310_v32  ;;  %2586 = vrcp.f32 %v1278_v56  ;;  %v1366_v35 = vmul.f32 %v3549_v25, %v1341_v7  ;;  %v1365_v16 = vmul.f32 %v3547_v45, %v1341_v7  ;;  %v1834_v7 = vld [vmem:[#allocation5 + $0x20] sm:$0xff] }
 0x330   : > { %v2581_v24 = vpop.eup %2580 }
 0x331   : > { %v1342_v46 = vmul.f32 %v2579_v22, %v1326_v14  ;;  %v1311_v60 = vmul.f32 %v2581_v24, %v1269_v0  ;;  %1789 = vmatprep.mubr.f32.mxu1 %v1366_v35  ;;  %v1835_v35 = vld [vmem:[#allocation5 + $0x28] sm:$0xff] }
 0x332   : > { %v1281_v8 = vpop.xlane.xlu1 %1280  ;;  %1790 = vmatmul.mubr.f32.gmra.mxu1 %v1365_v16 }
 0x333   : > { %v1327_v26 = vsub.f32 2.0, %v1311_v60  ;;  %2588 = vrcp.f32 %v1281_v8  ;;  %v1368_v31 = vmul.f32 %v3557_v4, %v1342_v46  ;;  %v1367_v44 = vmul.f32 %v3555_v54, %v1342_v46  ;;  %v1836_v60 = vld [vmem:[#allocation5 + $0x30] sm:$0xff] }
 0x334   : > { %v2583_v15 = vpop.eup %2582 }
 0x335   : > { %v1343_v21 = vmul.f32 %v2581_v24, %v1327_v26  ;;  %v1312_v27 = vmul.f32 %v2583_v15, %v1272_v3  ;;  %1794 = vmatprep.mubr.f32.mxu1 %v1368_v31 }
 0x336   : > { %v1284_v6 = vpop.xlane.xlu0 %1283  ;;  %1795 = vmatmul.mubr.f32.gmra.mxu1 %v1367_v44  ;;  %v1837_v44 = vld [vmem:[#allocation5 + $0x38] sm:$0xff] }
 0x337   : > { %v1328_v25 = vsub.f32 2.0, %v1312_v27  ;;  %2590 = vrcp.f32 %v1284_v6  ;;  %v1370_v45 = vmul.f32 %v3565_v9, %v1343_v21  ;;  %v1369_v57 = vmul.f32 %v3563_v43, %v1343_v21 }
 0x338   : > { %v2585_v39 = vpop.eup %2584 }
 0x339   : > { %v1344_v41 = vmul.f32 %v2583_v15, %v1328_v25  ;;  %v1313_v37 = vmul.f32 %v2585_v39, %v1275_v53  ;;  %1799 = vmatprep.mubr.f32.mxu1 %v1370_v45 }
 0x33a   : > { %1800 = vmatmul.mubr.f32.gmra.mxu1 %v1369_v57 }
 0x33b   : > { %v1329_v4 = vsub.f32 2.0, %v1313_v37  ;;  %v1372_v54 = vmul.f32 %v3573_v18, %v1344_v41  ;;  %v1371_v59 = vmul.f32 %v3571_v19, %v1344_v41 }
 0x33c   : > { %v2587_v20 = vpop.eup %2586 }
 0x33d   : > { %v1345_v33 = vmul.f32 %v2585_v39, %v1329_v4  ;;  %v1314_v28 = vmul.f32 %v2587_v20, %v1278_v56  ;;  %1804 = vmatprep.mubr.f32.mxu1 %v1372_v54  ;;  %v1839_v39 = vld [vmem:[#allocation5 + $0x48] sm:$0xff]  ;;  %v1840_v54 = vld [vmem:[#allocation5 + $0x50] sm:$0xff] }
 0x33e   : > { %1805 = vmatmul.mubr.f32.gmra.mxu1 %v1371_v59 }
 0x33f   : > { %v1330_v42 = vsub.f32 2.0, %v1314_v28  ;;  %v1374_v9 = vmul.f32 %v3579_v1, %v1345_v33  ;;  %v1373_v43 = vmul.f32 %v3577_v17, %v1345_v33  ;;  %v1841_v28 = vld [vmem:[#allocation5 + $0x58] sm:$0xff] }
 0x340   : > { %v2589_v50 = vpop.eup %2588 }
 0x341   : > { %v1346_v36 = vmul.f32 %v2587_v20, %v1330_v42  ;;  %v1315_v55 = vmul.f32 %v2589_v50, %v1281_v8  ;;  %1809 = vmatprep.mubr.f32.mxu1 %v1374_v9 }
 0x342   : > { %1810 = vmatmul.mubr.f32.gmra.mxu1 %v1373_v43 }
 0x343   : > { %v1331_v0 = vsub.f32 2.0, %v1315_v55  ;;  %v1376_v18 = vmul.f32 %v3585_v49, %v1346_v36  ;;  %v1375_v19 = vmul.f32 %v3583_v61, %v1346_v36  ;;  %v3853_v61 = vmov 0.0   ;;  %v1830_v49 = vld [vmem:[#allocation5] sm:$0xff] }
 0x344   : > { %v2591_v58 = vpop.eup %2590 }
 0x345   : > { %v1347_v11 = vmul.f32 %v2589_v50, %v1331_v0  ;;  %v1316_v52 = vmul.f32 %v2591_v58, %v1284_v6  ;;  %1814 = vmatprep.mubr.f32.mxu1 %v1376_v18  ;;  %v1838_v6 = vld [vmem:[#allocation5 + $0x40] sm:$0xff]  ;;  %v1843_v18 = vld [vmem:[#allocation5 + $0x68] sm:$0xff] }
 0x346   : > { %1815 = vmatmul.mubr.f32.gmra.mxu1 %v1375_v19  ;;  %v1842_v50 = vld [vmem:[#allocation5 + $0x60] sm:$0xff] }
 0x347   : > { %v1332_v30 = vsub.f32 2.0, %v1316_v52  ;;  %v1378_v1 = vmul.f32 %v3591_v48, %v1347_v11  ;;  %v1377_v17 = vmul.f32 %v3589_v12, %v1347_v11  ;;  %v1844_v52 = vld [vmem:[#allocation5 + $0x70] sm:$0xff] }
 0x349   : > { %v1348_v13 = vmul.f32 %v2591_v58, %v1332_v30  ;;  %1819 = vmatprep.mubr.f32.mxu1 %v1378_v1 }
 0x34a   : > { %1820 = vmatmul.mubr.f32.gmra.mxu1 %v1377_v17 }
 0x34b   : > { %v1380_v34 = vmul.f32 %v3597_v2, %v1348_v13  ;;  %v1379_v3 = vmul.f32 %v3595_v63, %v1348_v13  ;;  %v1845_v13 = vld [vmem:[#allocation5 + $0x78] sm:$0xff] }
 0x34d   : > { %1824 = vmatprep.mubr.f32.mxu1 %v1380_v34 }
 0x34e   : > { %1825 = vmatmul.mubr.f32.gmra.mxu1 %v1379_v3 }
 0x34f   : > { %2126 = vmatprep.mubr.f32.mxu1 %v3853_v61 }
 0x3d2   : > { %v1751_v10 = vpop.f32.mrf.mxu1 }
 0x3d3   : > { %v1846_v23 = vmul.f32 %v1830_v49, %v1751_v10 }
 0x3d4   : > { %v1753_v40 = vpop.f32.mrf.mxu1 }
 0x3d5   : > { %1862 = vxpose.xlu1.b32.start [1/16] %v1846_v23, 128 }
 0x3d6   : > { %v1756_v48 = vpop.f32.mrf.mxu1 }
 0x3d7   : > { %v1847_v38 = vmul.f32 %v1831_v29, %v1756_v48 }
 0x3d8   : > { %v1758_v12 = vpop.f32.mrf.mxu1 }
 0x3d9   : > { %1863 = vxpose.xlu1.b32.cont [2/16] %v1847_v38, 128 }
 0x3da   : > { %v1761_v53 = vpop.f32.mrf.mxu1 }
 0x3db   : > { %v1848_v47 = vmul.f32 %v1832_v62, %v1761_v53 }
 0x3dc   : > { %v1763_v2 = vpop.f32.mrf.mxu1 }
 0x3dd   : > { %1864 = vxpose.xlu1.b32.cont [3/16] %v1848_v47, 128 }
 0x3de   : > { %v1766_v63 = vpop.f32.mrf.mxu1 }
 0x3df   : > { %v1849_v5 = vmul.f32 %v1833_v51, %v1766_v63 }
 0x3e0   : > { %v1768_v22 = vpop.f32.mrf.mxu1 }
 0x3e1   : > { %1865 = vxpose.xlu1.b32.cont [4/16] %v1849_v5, 128 }
 0x3e2   : > { %v1771_v32 = vpop.f32.mrf.mxu1 }
 0x3e3   : > { %v1850_v56 = vmul.f32 %v1834_v7, %v1771_v32  ;;  %v2056_v32 = vld [vmem:[%s3713_s6] sm:$0xff] }
 0x3e4   : > { %v1773_v14 = vpop.f32.mrf.mxu1 }
 0x3e5   : > { %1866 = vxpose.xlu1.b32.cont [5/16] %v1850_v56, 128  ;;  %v2723_v56 = vmov 0  }
 0x3e6   : > { %v1776_v16 = vpop.f32.mrf.mxu1  ;;  %2415 = vset.pattern.permute.xlu0 %v2723_v56 }
 0x3e7   : > { %v1851_v24 = vmul.f32 %v1835_v35, %v1776_v16  ;;  %2059 = vperm.xlu0 %2415, %v2056_v32  }
 0x3e8   : > { %v1778_v46 = vpop.f32.mrf.mxu1 }
 0x3e9   : > { %1867 = vxpose.xlu1.b32.cont [6/16] %v1851_v24, 128 }
 0x3ea   : > { %v1781_v8 = vpop.f32.mrf.mxu1 }
 0x3eb   : > { %v1852_v26 = vmul.f32 %v1836_v60, %v1781_v8 }
 0x3ec   : > { %v1783_v31 = vpop.f32.mrf.mxu1 }
 0x3ed   : > { %1868 = vxpose.xlu1.b32.cont [7/16] %v1852_v26, 128 }
 0x3ee   : > { %v1786_v15 = vpop.f32.mrf.mxu1 }
 0x3ef   : > { %v1853_v21 = vmul.f32 %v1837_v44, %v1786_v15 }
 0x3f0   : > { %v1788_v27 = vpop.f32.mrf.mxu1 }
 0x3f1   : > { %1869 = vxpose.xlu1.b32.cont [8/16] %v1853_v21, 128 }
 0x3f2   : > { %v1791_v25 = vpop.f32.mrf.mxu1 }
 0x3f3   : > { %v1854_v45 = vmul.f32 %v1838_v6, %v1791_v25 }
 0x3f4   : > { %v1793_v57 = vpop.f32.mrf.mxu1 }
 0x3f5   : > { %1870 = vxpose.xlu1.b32.cont [9/16] %v1854_v45, 128 }
 0x3f6   : > { %v1796_v41 = vpop.f32.mrf.mxu1 }
 0x3f7   : > { %v1855_v37 = vmul.f32 %v1839_v39, %v1796_v41 }
 0x3f8   : > { %v1798_v4 = vpop.f32.mrf.mxu1 }
 0x3f9   : > { %1871 = vxpose.xlu1.b32.cont [10/16] %v1855_v37, 128 }
 0x3fa   : > { %v1801_v59 = vpop.f32.mrf.mxu1 }
 0x3fb   : > { %v1856_v20 = vmul.f32 %v1840_v54, %v1801_v59 }
 0x3fc   : > { %v1803_v33 = vpop.f32.mrf.mxu1 }
 0x3fd   : > { %1872 = vxpose.xlu1.b32.cont [11/16] %v1856_v20, 128 }
 0x3fe   : > { %v1806_v42 = vpop.f32.mrf.mxu1 }
 0x3ff   : > { %v1857_v9 = vmul.f32 %v1841_v28, %v1806_v42 }
 0x400   : > { %v1808_v43 = vpop.f32.mrf.mxu1 }
 0x401   : > { %1873 = vxpose.xlu1.b32.cont [12/16] %v1857_v9, 128 }
 0x402   : > { %v1811_v36 = vpop.f32.mrf.mxu1 }
 0x403   : > { %v1858_v55 = vmul.f32 %v1842_v50, %v1811_v36 }
 0x404   : > { %v1813_v0 = vpop.f32.mrf.mxu1 }
 0x405   : > { %1874 = vxpose.xlu1.b32.cont [13/16] %v1858_v55, 128  ;;  %v2055_v55 = vld [vmem:[%s3712_s5] sm:$0xff] }
 0x406   : > { %v1816_v19 = vpop.f32.mrf.mxu1 }
 0x407   : > { %v1859_v58 = vmul.f32 %v1843_v18, %v1816_v19 }
 0x408   : > { %v1818_v11 = vpop.f32.mrf.mxu1 }
 0x409   : > { %1875 = vxpose.xlu1.b32.cont [14/16] %v1859_v58, 128 }
 0x40a   : > { %v1821_v30 = vpop.f32.mrf.mxu1 }
 0x40b   : > { %v1860_v1 = vmul.f32 %v1844_v52, %v1821_v30 }
 0x40c   : > { %v1823_v17 = vpop.f32.mrf.mxu1 }
 0x40d   : > { %1876 = vxpose.xlu1.b32.cont [15/16] %v1860_v1, 128 }
 0x40e   : > { %v1826_v34 = vpop.f32.mrf.mxu1 }
 0x40f   : > { %v1861_v3 = vmul.f32 %v1845_v13, %v1826_v34 }
 0x410   : > { %v1828_v49 = vpop.f32.mrf.mxu1 }
 0x411   : > { %1877 = vxpose.xlu1.b32.end [16/16] %v1861_v3, 128 }
 0x451   : > { %v1878_v10 = vpop.trf.xlu1 }
 0x452   : > { %1959 = vmatmul.mubr.f32.vlgmr.msra.gmra.mxu0 %v1878_v10 }
 0x453   : > { %1964 = vmatprep.mubr.f32.mxu0 %v3853_v61 }
 0x455   : > { %v1879_v23 = vpop.trf.xlu1 }
 0x456   : > { %1965 = vmatmul.mubr.f32.gmra.mxu0 %v1879_v23 }
 0x457   : > { %1970 = vmatprep.mubr.f32.mxu0 %v3853_v61 }
 0x459   : > { %v1880_v40 = vpop.trf.xlu1 }
 0x45a   : > { %1971 = vmatmul.mubr.f32.gmra.mxu0 %v1880_v40 }
 0x45b   : > { %1976 = vmatprep.mubr.f32.mxu0 %v3853_v61 }
 0x45d   : > { %v1881_v29 = vpop.trf.xlu1 }
 0x45e   : > { %1977 = vmatmul.mubr.f32.gmra.mxu0 %v1881_v29 }
 0x45f   : > { %1982 = vmatprep.mubr.f32.mxu0 %v3853_v61 }
 0x461   : > { %v1882_v48 = vpop.trf.xlu1 }
 0x462   : > { %1983 = vmatmul.mubr.f32.gmra.mxu0 %v1882_v48  ;;  %v2060_v18 = vpop.permute.xlu0 %2059 }
 0x463   : > { %1988 = vmatprep.mubr.f32.mxu0 %v3853_v61 }
 0x465   : > { %v1883_v38 = vpop.trf.xlu1 }
 0x466   : > { %1989 = vmatmul.mubr.f32.gmra.mxu0 %v1883_v38 }
 0x467   : > { %1994 = vmatprep.mubr.f32.mxu0 %v3853_v61 }
 0x469   : > { %v1884_v12 = vpop.trf.xlu1 }
 0x46a   : > { %1995 = vmatmul.mubr.f32.gmra.mxu0 %v1884_v12  ;;  %v2167_v12 = vld [vmem:[%s3714_s7] sm:$0xff] }
 0x46b   : > { %2000 = vmatprep.mubr.f32.mxu0 %v3853_v61 }
 0x46d   : > { %v1885_v62 = vpop.trf.xlu1 }
 0x46e   : > { %2001 = vmatmul.mubr.f32.gmra.mxu0 %v1885_v62  ;;  %v2175_v62 = vld [vmem:[%s3715_s8] sm:$0xff] }
 0x46f   : > { %2006 = vmatprep.mubr.f32.mxu0 %v3853_v61 }
 0x471   : > { %v1886_v53 = vpop.trf.xlu1 }
 0x472   : > { %2007 = vmatmul.mubr.f32.gmra.mxu0 %v1886_v53 }
 0x473   : > { %2012 = vmatprep.mubr.f32.mxu0 %v3853_v61 }
 0x475   : > { %v1887_v47 = vpop.trf.xlu1 }
 0x476   : > { %2013 = vmatmul.mubr.f32.gmra.mxu0 %v1887_v47 }
 0x477   : > { %2018 = vmatprep.mubr.f32.mxu0 %v3853_v61 }
 0x479   : > { %v1888_v2 = vpop.trf.xlu1 }
 0x47a   : > { %2019 = vmatmul.mubr.f32.gmra.mxu0 %v1888_v2 }
 0x47b   : > { %2024 = vmatprep.mubr.f32.mxu0 %v3853_v61 }
 0x47d   : > { %v1889_v51 = vpop.trf.xlu1 }
 0x47e   : > { %2025 = vmatmul.mubr.f32.gmra.mxu0 %v1889_v51 }
 0x47f   : > { %2030 = vmatprep.mubr.f32.mxu0 %v3853_v61 }
 0x481   : > { %v1890_v63 = vpop.trf.xlu1 }
 0x482   : > { %2031 = vmatmul.mubr.f32.gmra.mxu0 %v1890_v63 }
 0x483   : > { %2036 = vmatprep.mubr.f32.mxu0 %v3853_v61 }
 0x485   : > { %v1891_v5 = vpop.trf.xlu1 }
 0x486   : > { %2037 = vmatmul.mubr.f32.gmra.mxu0 %v1891_v5 }
 0x487   : > { %2042 = vmatprep.mubr.f32.mxu0 %v3853_v61 }
 0x489   : > { %v1892_v22 = vpop.trf.xlu1 }
 0x48a   : > { %2043 = vmatmul.mubr.f32.gmra.mxu0 %v1892_v22 }
 0x48b   : > { %2048 = vmatprep.mubr.f32.mxu0 %v3853_v61 }
 0x48d   : > { %v1893_v7 = vpop.trf.xlu1 }
 0x48e   : > { %2049 = vmatmul.mubr.f32.gmra.mxu0 %v1893_v7 }
 0x512   : > { %v3652_v14 = vpop.f32.mrf.mxu0 }
 0x514   : > { %v1962_v35 = vpop.f32.mrf.mxu0 }
 0x516   : > { %v1966_v16 = vpop.f32.mrf.mxu0 }
 0x518   : > { %v1968_v24 = vpop.f32.mrf.mxu0 }
 0x51a   : > { %v1972_v46 = vpop.f32.mrf.mxu0 }
 0x51c   : > { %v1974_v60 = vpop.f32.mrf.mxu0 }
 0x51e   : > { %v1978_v8 = vpop.f32.mrf.mxu0 }
 0x520   : > { %v1980_v26 = vpop.f32.mrf.mxu0 }
 0x522   : > { %v1984_v31 = vpop.f32.mrf.mxu0 }
 0x524   : > { %v1986_v61 = vpop.f32.mrf.mxu0 }
 0x526   : > { %v1990_v44 = vpop.f32.mrf.mxu0 }
 0x528   : > { %v1992_v15 = vpop.f32.mrf.mxu0 }
 0x52a   : > { %v1996_v21 = vpop.f32.mrf.mxu0 }
 0x52c   : > { %v1998_v27 = vpop.f32.mrf.mxu0 }
 0x52e   : > { %v2002_v6 = vpop.f32.mrf.mxu0 }
 0x530   : > { %v2004_v25 = vpop.f32.mrf.mxu0 }
 0x532   : > { %v2008_v45 = vpop.f32.mrf.mxu0 }
 0x534   : > { %v2010_v57 = vpop.f32.mrf.mxu0 }
 0x536   : > { %v2014_v39 = vpop.f32.mrf.mxu0 }
 0x538   : > { %v2016_v41 = vpop.f32.mrf.mxu0 }
 0x53a   : > { %v2020_v37 = vpop.f32.mrf.mxu0 }
 0x53c   : > { %v2022_v4 = vpop.f32.mrf.mxu0 }
 0x53e   : > { %v2026_v54 = vpop.f32.mrf.mxu0 }
 0x540   : > { %v2028_v59 = vpop.f32.mrf.mxu0 }
 0x542   : > { %v2032_v20 = vpop.f32.mrf.mxu0 }
 0x544   : > { %v2034_v33 = vpop.f32.mrf.mxu0 }
 0x546   : > { %v2038_v28 = vpop.f32.mrf.mxu0 }
 0x548   : > { %v2040_v42 = vpop.f32.mrf.mxu0 }
 0x54a   : > { %v2044_v9 = vpop.f32.mrf.mxu0 }
 0x54c   : > { %v2046_v43 = vpop.f32.mrf.mxu0 }
 0x54e   : > { %v2050_v50 = vpop.f32.mrf.mxu0 }
 0x550   : > { %v2052_v36 = vpop.f32.mrf.mxu0 }
 0x551   : > { %2062 = vmatprep.subr.mxu1 %v2052_v36 }
 0x552   : > { %2063 = vmatpush1.msra.mxu1 %v2050_v50 }
 0x553   : > { %2064 = vmatprep.subr.mxu1 %v2046_v43 }
 0x554   : > { %2065 = vmatpush1.msra.mxu1 %v2044_v9 }
 0x555   : > { %2066 = vmatprep.subr.mxu1 %v2040_v42 }
 0x556   : > { %2067 = vmatpush1.msra.mxu1 %v2038_v28 }
 0x557   : > { %2068 = vmatprep.subr.mxu1 %v2034_v33 }
 0x558   : > { %2069 = vmatpush1.msra.mxu1 %v2032_v20 }
 0x559   : > { %2070 = vmatprep.subr.mxu1 %v2028_v59 }
 0x55a   : > { %2071 = vmatpush1.msra.mxu1 %v2026_v54 }
 0x55b   : > { %2072 = vmatprep.subr.mxu1 %v2022_v4 }
 0x55c   : > { %2073 = vmatpush1.msra.mxu1 %v2020_v37 }
 0x55d   : > { %2074 = vmatprep.subr.mxu1 %v2016_v41 }
 0x55e   : > { %2075 = vmatpush1.msra.mxu1 %v2014_v39 }
 0x55f   : > { %2076 = vmatprep.subr.mxu1 %v2010_v57 }
 0x560   : > { %2077 = vmatpush1.msra.mxu1 %v2008_v45 }
 0x561   : > { %2078 = vmatprep.subr.mxu1 %v2004_v25 }
 0x562   : > { %2079 = vmatpush1.msra.mxu1 %v2002_v6 }
 0x563   : > { %2080 = vmatprep.subr.mxu1 %v1998_v27 }
 0x564   : > { %2081 = vmatpush1.msra.mxu1 %v1996_v21 }
 0x565   : > { %2082 = vmatprep.subr.mxu1 %v1992_v15 }
 0x566   : > { %2083 = vmatpush1.msra.mxu1 %v1990_v44 }
 0x567   : > { %2084 = vmatprep.subr.mxu1 %v1986_v61 }
 0x568   : > { %2085 = vmatpush1.msra.mxu1 %v1984_v31 }
 0x569   : > { %2086 = vmatprep.subr.mxu1 %v1980_v26 }
 0x56a   : > { %2087 = vmatpush1.msra.mxu1 %v1978_v8 }
 0x56b   : > { %2088 = vmatprep.subr.mxu1 %v1974_v60 }
 0x56c   : > { %2089 = vmatpush1.msra.mxu1 %v1972_v46 }
 0x56d   : > { %2090 = vmatprep.subr.mxu1 %v1968_v24 }
 0x56e   : > { %2091 = vmatpush1.msra.mxu1 %v1966_v16 }
 0x56f   : > { %2092 = vmatprep.subr.mxu1 %v1962_v35 }
 0x570   : > { %2093 = vmatpush1.msra.mxu1 %v3652_v14 }
 0x571   : > { %2127 = vmatmul.mubr.f32.vlgmr.msra.gmra.mxu1 %v2055_v55 }
 0x631   : > { %v2128_v0 = vpop.f32.mrf.mxu1 }
 0x632   : > { %v2129_v58 = vadd.f32 %v2128_v0, %v2060_v18 }
 0x633   : > { %v2130_v19 = vpop.f32.mrf.mxu1 }
 0x634   : > { %v2131_v11 = vadd.f32 %v2130_v19, %v2060_v18 }
 0x636   : > { %v2133_v52 = vadd.f32 %v2131_v11, %v2129_v58 }
 0x638   : > { %2134 = vadd.xlane.f32.xlu0 %v2133_v52 }
 0x6c1   : > { %v2135_v30 = vpop.xlane.xlu0 %2134 }
 0x6c2   : > { %v2136_v1 = vrot.slane %v2135_v30, 4 }
 0x6c4   : > { %v2137_v17 = vadd.f32 %v2136_v1, %v2135_v30 }
 0x6c6   : > { %v2138_v13 = vrot.slane %v2137_v17, 2 }
 0x6c8   : > { %v2139_v34 = vadd.f32 %v2138_v13, %v2137_v17 }
 0x6ca   : > { %v2140_v3 = vrot.slane %v2139_v34, 1 }
 0x6cc   : > { %v2141_v49 = vadd.f32 %v2140_v3, %v2139_v34 }
 0x6ce   : > { %2348 = vpush %v2141_v49 }
 0x6ff   : > { %s2349_s19 = spop %2348 }
 0x700   : > { %s2143_s18 = smul.f32 0.00048828125, %s2349_s19 }
 0x702   : > { %v2144_v10 = vstv %s2143_s18  ;;  %s3670_s18 = scalar_lea.hbm %s3716_s9, %s2345_s28 }
 0x703   : > { %v2145_v23 = vsub.f32 %v2129_v58, %v2144_v10  ;;  %v2146_v40 = vsub.f32 %v2131_v11, %v2144_v10 }
 0x705   : > { %v2147_v29 = vmul.f32 %v2145_v23, %v2145_v23  ;;  %v2148_v48 = vmul.f32 %v2146_v40, %v2146_v40 }
 0x707   : > { %v2149_v38 = vadd.f32 %v2148_v48, %v2147_v29 }
 0x709   : > { %2150 = vadd.xlane.f32.xlu0 %v2149_v38 }
 0x71f   : > { %2170 = vperm.xlu0 %2415, %v2167_v12  }
 0x723   : > { %2178 = vperm.xlu0 %2415, %v2175_v62  }
 0x792   : > { %v2151_v53 = vpop.xlane.xlu0 %2150 }
 0x793   : > { %v2152_v47 = vrot.slane %v2151_v53, 4 }
 0x795   : > { %v2153_v2 = vadd.f32 %v2152_v47, %v2151_v53 }
 0x797   : > { %v2154_v51 = vrot.slane %v2153_v2, 2 }
 0x799   : > { %v2155_v63 = vadd.f32 %v2154_v51, %v2153_v2 }
 0x79a   : > { %v2171_v56 = vpop.permute.xlu0 %2170 }
 0x79b   : > { %v2156_v5 = vrot.slane %v2155_v63, 1 }
 0x79d   : > { %v2157_v22 = vadd.f32 %v2156_v5, %v2155_v63 }
 0x79e   : > { %v2179_v60 = vpop.permute.xlu0 %2178 }
 0x79f   : > { %2350 = vpush %v2157_v22 }
 0x7d0   : > { %s2351_s15 = spop %2350 }
 0x7d1   : > { %s2159_s22 = smul.f32 0.00048828125, %s2351_s15 }
 0x7d3   : > { %s2160_s23 = sadd.f32 1e-05, %s2159_s22 }
 0x7d5   : > { %v2161_v7 = vstv %s2160_s23 }
 0x7d6   : > { %2592 = vrsqrt.f32 %v2161_v7 }
 0x7e3   : > { %v2593_v32 = vpop.eup %2592 }
 0x7e4   : > { %2352 = vpush %v2593_v32 }
 0x815   : > { %s2353_s25 = spop %2352 }
 0x816   : > { %v2164_v14 = vstv %s2353_s25 }
 0x817   : > { %v2165_v35 = vmul.f32 %v2164_v14, %v2145_v23  ;;  %v2166_v16 = vmul.f32 %v2164_v14, %v2146_v40 }
 0x819   : > { %v2173_v24 = vmul.f32 %v2171_v56, %v2165_v35  ;;  %v2174_v46 = vmul.f32 %v2171_v56, %v2166_v16 }
 0x81b   : > { %v2181_v8 = vadd.f32 %v2179_v60, %v2173_v24  ;;  %v2182_v26 = vadd.f32 %v2179_v60, %v2174_v46 }
 0x81d   : > { %2183 = vst [vmem:[%s363_s24] sm:$0xff] %v2181_v8  ;;  %2184 = vst [vmem:[%s363_s24 + $0x8] sm:$0xff] %v2182_v26 }
 0x81e   : > { %2661 = shalt.err (!%p2658_p0)
}
 0x81f   : > { %s2662_s27 = scalar_lea.hbm %s3670_s18, 256  ;;  %s2666_s22 = scalar_lea.hbm %s3716_s9, 512 }
 0x820   : > { %p2663_p5 = scmp.ne.s32.totalorder %s3670_s18, %s2662_s27  ;;  %p2667_p1 = scmp.lt.s32.totalorder %s3670_s18, %s3716_s9 }
 0x821   : > { %p2668_p4 = scmp.lt.s32.totalorder %s2666_s22, %s2662_s27 }
 0x822   : > { %p2664_p9 = pnand %p2663_p5, %p3854_p3 }
 0x823   : > { %p2669_p6 = por %p2668_p4, %p2667_p1 }
 0x824   : > { %p2665_p12 = pneg %p2664_p9 }
 0x826   : > { %p2670_p8 = pnand %p2669_p6, %p2665_p12 }
 0x828   : > { %2673 = shalt.err (!%p2670_p8)
}
 0x829   : > { %2360 = dma.vmem_to_hbm [thread:$0]  (%p3854_p3), %s2201_s20, 256, %s3670_s18, %s2186_s4  }
 0x82a PF: > { %s3855_s28 = sld [smem:[#allocation11_spill]]  ;;  %s2212_s24 = sand.u32 1, %s2704_s30  }
 0x82b   : > { %p3857_p7 = scmp.ge.s32.totalorder %s2716_s12, 2  ;;  %s2213_s21 = scalar_lea.sflag [#allocation4], %s2212_s24 }
 0x830   : > { %p3856_p11 = scmp.ne.s32.totalorder %s3855_s28, 0 }
 0x832   : > { %p2371_p10 = pnand %p3857_p7, %p3856_p11 }
 0x834   : > { %p2372_p2 = pneg %p2371_p10 }
 0x836   : > { %2699 = dma.done.wait (%p2372_p2), %s2213_s21, 256  }
 0x837   : > { %2701 = vsyncadd (%p2372_p2), %s2213_s21, 4294967040  ;;  %s3858_s12 = sld [smem:[#allocation12_spill]]  ;;  %s3860_s30 = smov %s2708_s10 }
 0x838   : > { %s3859_s19 = sld [smem:[#allocation13_spill]]  ;;  %s3861_s10 = smov %s2712_s11 }
 0x83d   : > { %p23_p13 = scmp.ge.s32.totalorder %s3858_s12, 4  }
 0x83e   : > { %s3862_s11 = smov %s3859_s19 }
 0x83f   :  { %25 = sbr.rel (!%p23_p13) target bundleno = 8 (0x8), region = 105 }
 0x844   :  { %2218 = vsyncpa [#allocation3], 1 }
 0x845   :  { %2220 = vsyncpa [#allocation3 + $0x1], 1 }
 0x846   :  { %2221 = vsyncpa [#allocation6], 1 }
 0x847   :  { %2222 = vsyncpa [#allocation4], 1 }
 0x848   :  { %2224 = vsyncpa [#allocation4 + $0x1], 1 }

</bundles_post_ra>
